<compile_context>
chip_gen: v7x
topology: tpu7x:2x2x1
jax: 0.10.0
libtpu: 0.0.40
codegen_flags: <defaults>
</compile_context>

<pallas_src>
import functools

import jax
import jax.numpy as jnp
from jax.experimental import pallas as pl
from jax.experimental.pallas import tpu as pltpu


# ------------------------------------------------------------------ Pallas kernels
def gemm_bn_kernel(p_ref, w_ref, g_ref, b_ref, o_ref, *, eps):
    """Transposed conv-as-GEMM with a fused BatchNorm epilogue.

    p_ref: (K, N)  patch matrix, bf16, lane-dense N = B*H*W, resident across the grid
    w_ref: (tc, K) output-channel tile of the weight matrix, bf16
    g_ref, b_ref: (tc, 1) BN affine parameters, f32
    o_ref: (tc, N) normalized output tile (lane-dense)
    """
    y = jnp.dot(w_ref[...], p_ref[...], preferred_element_type=jnp.float32)  # (tc, N)
    inv_n = 1.0 / y.shape[1]
    mean = jnp.sum(y, axis=1, keepdims=True) * inv_n
    var = jnp.sum(jnp.square(y - mean), axis=1, keepdims=True) * inv_n  # biased, as torch
    inv = jax.lax.rsqrt(var + eps)
    o_ref[...] = ((y - mean) * (inv * g_ref[...]) + b_ref[...]).astype(o_ref.dtype)


def attn_hw_kernel(qh_ref, kh_ref, vh_ref, qw_ref, kw_ref, vw_ref, x_ref, o_ref,
                   *, gamma_h, gamma_w):
    """Both self-attention branches + residuals + Hx+Wx sum, one batch per grid step.

    All operands are the transposed torch view:  qT/kT: (A, Lq), vT/xT/out: (A, Lv),
    so the value bmm and the output are lane-dense in Lv = C*H*W/A.
    """
    def branch(q_ref, k_ref, v_ref):
        qT = q_ref[0]                                   # (A, Lq) bf16
        kT = k_ref[0]                                   # (A, Lq) bf16
        vT = v_ref[0]                                   # (A, Lv) bf16
        # attention_map[a1, a2] = sum_l q_view[l, a1] * k_view[l, a2]
        s = jax.lax.dot_general(qT, kT, (((1,), (1,)), ((), ())),
                                preferred_element_type=jnp.float32)     # (A, A)
        s = s - jnp.max(s, axis=-1, keepdims=True)
        e = jnp.exp(s)
        p = e * pl.reciprocal(jnp.sum(e, axis=-1, keepdims=True), approx=True)
        # out^T = softmax(attn) @ v^T  -> (A, Lv), lane-dense
        return jnp.dot(p.astype(vT.dtype), vT, preferred_element_type=jnp.float32)

    oh = branch(qh_ref, kh_ref, vh_ref)
    ow = branch(qw_ref, kw_ref, vw_ref)
    xT = x_ref[0].astype(jnp.float32)
    # Hx + Wx = gamma_h*out_h + gamma_w*out_w + 2*x   (elementwise, commutes with views)
    o_ref[0] = (gamma_h * oh + gamma_w * ow + 2.0 * xT).astype(o_ref.dtype)


# ------------------------------------------------------------------ wrappers / glue
_VMEM_LIMIT = 48 * 1024 * 1024


def conv_bn_fused(patches, wmat, bn_g, bn_b, out_dtype=jnp.bfloat16):
    """One pallas_call: GEMM over output-channel tiles + fused BatchNorm epilogue."""
    C_out, K = wmat.shape
    _, N = patches.shape
    tc = 16 if C_out % 16 == 0 else (8 if C_out % 8 == 0 else C_out)
    grid = (C_out // tc,)
    return pl.pallas_call(
        functools.partial(gemm_bn_kernel, eps=1e-5),
        out_shape=jax.ShapeDtypeStruct((C_out, N), out_dtype),
        grid=grid,
        in_specs=[
            pl.BlockSpec((K, N), lambda i: (0, 0)),    # patches, resident across steps
            pl.BlockSpec((tc, K), lambda i: (i, 0)),   # weight tile
            pl.BlockSpec((tc, 1), lambda i: (i, 0)),   # BN gamma
            pl.BlockSpec((tc, 1), lambda i: (i, 0)),   # BN beta
        ],
        out_specs=pl.BlockSpec((tc, N), lambda i: (i, 0)),
        compiler_params=pltpu.CompilerParams(
            dimension_semantics=("parallel",),
            vmem_limit_bytes=_VMEM_LIMIT),
    )(patches, wmat, bn_g.reshape(C_out, 1), bn_b.reshape(C_out, 1))


def _same_pad(k, d):
    # Replicates the padding arithmetic of the PyTorch `conv` module (padding='same').
    s = k + (k - 1) * (d - 1)
    return s // 2 + (s % 2 - 1)


def _im2col_cm(x2d, bhw, kh, kw, dh, dw):
    """Channel-major im2col: (C, B*H*W) -> (kh*kw*C, B*H*W), rows ordered (i, j, c)."""
    if kh == 1 and kw == 1:
        return x2d                                     # 1x1 conv: no im2col at all
    B, H, W = bhw
    C = x2d.shape[0]
    ph, pw = _same_pad(kh, dh), _same_pad(kw, dw)
    xp = jnp.pad(x2d.reshape(C, B, H, W), ((0, 0), (0, 0), (ph, ph), (pw, pw)))
    slabs = []
    for i in range(kh):
        for j in range(kw):
            slabs.append(xp[:, :, i * dh:i * dh + H, j * dw:j * dw + W])
    return jnp.concatenate(slabs, axis=0).reshape(kh * kw * C, B * H * W)


def conv_bn(x2d, bhw, w, g, b, dilation=(1, 1), out_dtype=jnp.bfloat16):
    """conv(..., bias=False, padding='same') + BatchNorm2d in (C, B*H*W) layout."""
    C_out, C_in, kh, kw = w.shape
    patches = _im2col_cm(x2d, bhw, kh, kw, dilation[0], dilation[1])
    # weight columns ordered (i, j, c_in) to match the patch-row ordering above
    wmat = w.transpose(0, 2, 3, 1).reshape(C_out, kh * kw * C_in).astype(jnp.bfloat16)
    return conv_bn_fused(patches, wmat, g, b, out_dtype)


def paa_forward(x, params):
    B, C_in, H, W = x.shape
    N, HW = B * H * W, H * W
    bhw = (B, H, W)

    # single tiny transpose into the channel-major flat layout (C, B*H*W), bf16
    x2d = x.transpose(1, 0, 2, 3).reshape(C_in, N).astype(jnp.bfloat16)

    x0 = conv_bn(x2d, bhw, params['w0'], params['g0'], params['b0'])
    x1 = conv_bn(x0, bhw, params['w1'], params['g1'], params['b1'])
    x2 = conv_bn(x1, bhw, params['w2'], params['g2'], params['b2'])
    C = x2.shape[0]
    C8 = C // 8

    # ---------------- fused q/k/v projections of BOTH attention branches (1x1 convs)
    ph, pw = params['hattn'], params['wattn']
    wqkv = jnp.concatenate(
        [ph['wq'].reshape(C8, C), ph['wk'].reshape(C8, C), ph['wv'].reshape(C, C),
         pw['wq'].reshape(C8, C), pw['wk'].reshape(C8, C), pw['wv'].reshape(C, C)],
        axis=0).astype(jnp.bfloat16)                                  # (2*(2*C8+C), C)
    gqkv = jnp.concatenate([ph['gq'], ph['gk'], ph['gv'], pw['gq'], pw['gk'], pw['gv']])
    bqkv = jnp.concatenate([ph['bq'], ph['bk'], ph['bv'], pw['bq'], pw['bk'], pw['bv']])
    qkv = conv_bn_fused(x2, wqkv, gqkv, bqkv)                         # (2*(2*C8+C), N)

    # ---------------- fused H- and W-attention + residuals + Hx+Wx sum
    # torch .view(B, -1, axis) is a raw row-major reshape of the NCHW tensor.
    assert H == W  # TODO(synk): for H != W the two branch views differ in shape; the
    #                Hx+Wx add would then need a glue-side reshape before summation.
    A = H
    Lq, Lv = C8 * HW // A, C * HW // A

    def viewT(rows2d):
        # (Cp, B*H*W) channel-major -> transposed torch view (B, A, Cp*H*W/A)
        Cp = rows2d.shape[0]
        L = Cp * HW // A
        t = rows2d.reshape(Cp, B, HW).transpose(1, 0, 2).reshape(B, L, A)
        return t.transpose(0, 2, 1)

    off = [0, C8, 2 * C8, 2 * C8 + C, 3 * C8 + C, 4 * C8 + C, 4 * C8 + 2 * C]
    qhT, khT, vhT = (viewT(qkv[off[i]:off[i + 1]]) for i in range(0, 3))
    qwT, kwT, vwT = (viewT(qkv[off[i]:off[i + 1]]) for i in range(3, 6))
    xT = viewT(x2)

    combT = pl.pallas_call(
        functools.partial(attn_hw_kernel,
                          gamma_h=ph['gamma'], gamma_w=pw['gamma']),
        out_shape=jax.ShapeDtypeStruct((B, A, Lv), jnp.bfloat16),
        grid=(B,),
        in_specs=[pl.BlockSpec((1, A, Lq), lambda b: (b, 0, 0)),
                  pl.BlockSpec((1, A, Lq), lambda b: (b, 0, 0)),
                  pl.BlockSpec((1, A, Lv), lambda b: (b, 0, 0)),
                  pl.BlockSpec((1, A, Lq), lambda b: (b, 0, 0)),
                  pl.BlockSpec((1, A, Lq), lambda b: (b, 0, 0)),
                  pl.BlockSpec((1, A, Lv), lambda b: (b, 0, 0)),
                  pl.BlockSpec((1, A, Lv), lambda b: (b, 0, 0))],
        out_specs=pl.BlockSpec((1, A, Lv), lambda b: (b, 0, 0)),
        compiler_params=pltpu.CompilerParams(
            dimension_semantics=("parallel",),
            vmem_limit_bytes=_VMEM_LIMIT),
    )(qhT, khT, vhT, qwT, kwT, vwT, xT)

    # back to the channel-major flat layout for conv3 (Hx + Wx already summed)
    hw_sum = (combT.transpose(0, 2, 1).reshape(B, C, HW)
              .transpose(1, 0, 2).reshape(C, N)).astype(jnp.bfloat16)

    y = conv_bn(hw_sum, bhw, params['w3'], params['g3'], params['b3'],
                dilation=(3, 3), out_dtype=jnp.float32)               # (C, N) f32
    return y.reshape(C, B, H, W).transpose(1, 0, 2, 3)                # NCHW out


# ------------------------------------------------------------------ parameters
def _kaiming(key, shape):
    fan_in = shape[1] * shape[2] * shape[3]
    return jax.random.normal(key, shape, jnp.float32) * jnp.sqrt(2.0 / fan_in)


def init_paa_params(key, in_channel, out_channel, receptive_size=3):
    ks = jax.random.split(key, 16)
    C, C8 = out_channel, out_channel // 8
    ones = lambda n: jnp.ones((n,), jnp.float32)
    zeros = lambda n: jnp.zeros((n,), jnp.float32)

    def attn_params(k0, k1, k2):
        return {
            'wq': _kaiming(k0, (C8, C, 1, 1)), 'gq': ones(C8), 'bq': zeros(C8),
            'wk': _kaiming(k1, (C8, C, 1, 1)), 'gk': ones(C8), 'bk': zeros(C8),
            'wv': _kaiming(k2, (C, C, 1, 1)),  'gv': ones(C),  'bv': zeros(C),
            # PyTorch initializes gamma to 0 (attention branch disabled at init);
            # use a nonzero deterministic value so the attention compute is exercised.
            'gamma': 0.1,
        }

    return {
        'w0': _kaiming(ks[0], (C, in_channel, 1, 1)), 'g0': ones(C), 'b0': zeros(C),
        'w1': _kaiming(ks[1], (C, C, 1, receptive_size)), 'g1': ones(C), 'b1': zeros(C),
        'w2': _kaiming(ks[2], (C, C, receptive_size, 1)), 'g2': ones(C), 'b2': zeros(C),
        'w3': _kaiming(ks[3], (C, C, 3, 3)), 'g3': ones(C), 'b3': zeros(C),
        'hattn': attn_params(ks[4], ks[5], ks[6]),
        'wattn': attn_params(ks[7], ks[8], ks[9]),
    }


if __name__ == "__main__":
    key = jax.random.PRNGKey(0)
    k_x, k_p = jax.random.split(key)
    in_channel, out_channel = 4, 32
    B, H, W = 2, 16, 16
    x = jax.random.normal(k_x, (B, in_channel, H, W), jnp.float32)
    params = init_paa_params(k_p, in_channel, out_channel, receptive_size=3)

    # params is closed over (gammas stay Python floats); jit fuses all layout glue.
    fwd = jax.jit(lambda xx: paa_forward(xx, params))
    out = jax.block_until_ready(fwd(x))
    assert out.shape == (B, out_channel, H, W)
    assert bool(jnp.all(jnp.isfinite(out)))
    print("KERNEL_OK")
</pallas_src>

<mosaic_0001>
module attributes {stable_mosaic.version = 11 : i64} {
  func.func @gemm_bn_kernel(%arg0: i32, %arg1: memref<4x512xbf16, #tpu.memory_space<vmem>>, %arg2: memref<16x4xbf16, #tpu.memory_space<vmem>>, %arg3: memref<16x1xf32, #tpu.memory_space<vmem>>, %arg4: memref<16x1xf32, #tpu.memory_space<vmem>>, %arg5: memref<16x512xbf16, #tpu.memory_space<vmem>>) attributes {dimension_semantics = [#tpu.dimension_semantics<parallel>], iteration_bounds = array<i64: 2>, scalar_prefetch = 0 : i64, scratch_operands = 0 : i64, tpu.core_type = #tpu.core_type<tc>, window_params = [{pipeline_mode = #tpu.pipeline_mode<synchronous>, transform_indices = @transform_0, window_bounds = array<i64: 4, 512>}, {transform_indices = @transform_1, window_bounds = array<i64: 16, 4>}, {transform_indices = @transform_2, window_bounds = array<i64: 16, 1>}, {transform_indices = @transform_3, window_bounds = array<i64: 16, 1>}, {transform_indices = @transform_4, window_bounds = array<i64: 16, 512>}]} {
    %c0 = arith.constant 0 : index
    %c0_0 = arith.constant 0 : index
    %0 = vector.load %arg2[%c0, %c0_0] : memref<16x4xbf16, #tpu.memory_space<vmem>>, vector<16x4xbf16>
    %c0_1 = arith.constant 0 : index
    %c0_2 = arith.constant 0 : index
    %1 = vector.load %arg1[%c0_1, %c0_2] : memref<4x512xbf16, #tpu.memory_space<vmem>>, vector<4x512xbf16>
    %cst = arith.constant dense<0.000000e+00> : vector<16x512xf32>
    %2 = tpu.matmul %0, %1, %cst {dimension_numbers = #tpu.dot_dimension_numbers<[1], [0], [0], [1], [0, 0, 1, 1], [], []>} : vector<16x4xbf16>, vector<4x512xbf16>, vector<16x512xf32> -> vector<16x512xf32>
    %cst_3 = arith.constant dense<0.000000e+00> : vector<16xf32>
    %3 = vector.multi_reduction <add>, %2, %cst_3 [1] : vector<16x512xf32> to vector<16xf32>
    %4 = vector.shape_cast %3 : vector<16xf32> to vector<16x1xf32>
    %cst_4 = arith.constant 0.001953125 : f32
    %5 = vector.broadcast %cst_4 : f32 to vector<16x1xf32>
    %6 = arith.mulf %4, %5 : vector<16x1xf32>
    %7 = vector.broadcast %6 : vector<16x1xf32> to vector<16x512xf32>
    %8 = arith.subf %2, %7 : vector<16x512xf32>
    %9 = arith.mulf %8, %8 : vector<16x512xf32>
    %cst_5 = arith.constant dense<0.000000e+00> : vector<16xf32>
    %10 = vector.multi_reduction <add>, %9, %cst_5 [1] : vector<16x512xf32> to vector<16xf32>
    %11 = vector.shape_cast %10 : vector<16xf32> to vector<16x1xf32>
    %cst_6 = arith.constant 0.001953125 : f32
    %12 = vector.broadcast %cst_6 : f32 to vector<16x1xf32>
    %13 = arith.mulf %11, %12 : vector<16x1xf32>
    %cst_7 = arith.constant 9.99999974E-6 : f32
    %14 = vector.broadcast %cst_7 : f32 to vector<16x1xf32>
    %15 = arith.addf %13, %14 : vector<16x1xf32>
    %16 = math.rsqrt %15 : vector<16x1xf32>
    %17 = vector.broadcast %6 : vector<16x1xf32> to vector<16x512xf32>
    %18 = arith.subf %2, %17 : vector<16x512xf32>
    %c0_8 = arith.constant 0 : index
    %c0_9 = arith.constant 0 : index
    %19 = vector.load %arg3[%c0_8, %c0_9] : memref<16x1xf32, #tpu.memory_space<vmem>>, vector<16x1xf32>
    %20 = arith.mulf %16, %19 : vector<16x1xf32>
    %21 = vector.broadcast %20 : vector<16x1xf32> to vector<16x512xf32>
    %22 = arith.mulf %18, %21 : vector<16x512xf32>
    %c0_10 = arith.constant 0 : index
    %c0_11 = arith.constant 0 : index
    %23 = vector.load %arg4[%c0_10, %c0_11] : memref<16x1xf32, #tpu.memory_space<vmem>>, vector<16x1xf32>
    %24 = vector.broadcast %23 : vector<16x1xf32> to vector<16x512xf32>
    %25 = arith.addf %22, %24 : vector<16x512xf32>
    %26 = arith.truncf %25 : vector<16x512xf32> to vector<16x512xbf16>
    %c0_12 = arith.constant 0 : index
    %c0_13 = arith.constant 0 : index
    %27 = vector.load %arg5[%c0_12, %c0_13] : memref<16x512xbf16, #tpu.memory_space<vmem>>, vector<16x512xbf16>
    tpu.vector_store %arg5[%c0_12, %c0_13], %26 {strides = array<i32>} : memref<16x512xbf16, #tpu.memory_space<vmem>>, vector<16x512xbf16>,
    return
  }
  func.func @transform_0(%arg0: i32) -> (i32, i32) {
    %c0_i32 = arith.constant 0 : i32
    %c0_i32_0 = arith.constant 0 : i32
    %c0_i32_1 = arith.constant 0 : i32
    return %c0_i32, %c0_i32_0 : i32, i32
  }
  func.func @transform_1(%arg0: i32) -> (i32, i32) {
    %c0_i32 = arith.constant 0 : i32
    %c0_i32_0 = arith.constant 0 : i32
    return %arg0, %c0_i32 : i32, i32
  }
  func.func @transform_2(%arg0: i32) -> (i32, i32) {
    %c0_i32 = arith.constant 0 : i32
    %c0_i32_0 = arith.constant 0 : i32
    return %arg0, %c0_i32 : i32, i32
  }
  func.func @transform_3(%arg0: i32) -> (i32, i32) {
    %c0_i32 = arith.constant 0 : i32
    %c0_i32_0 = arith.constant 0 : i32
    return %arg0, %c0_i32 : i32, i32
  }
  func.func @transform_4(%arg0: i32) -> (i32, i32) {
    %c0_i32 = arith.constant 0 : i32
    %c0_i32_0 = arith.constant 0 : i32
    return %arg0, %c0_i32 : i32, i32
  }
}

module attributes {stable_mosaic.version = 11 : i64} {
  func.func @gemm_bn_kernel(%arg0: i32, %arg1: memref<96x512xbf16, #tpu.memory_space<vmem>>, %arg2: memref<16x96xbf16, #tpu.memory_space<vmem>>, %arg3: memref<16x1xf32, #tpu.memory_space<vmem>>, %arg4: memref<16x1xf32, #tpu.memory_space<vmem>>, %arg5: memref<16x512xbf16, #tpu.memory_space<vmem>>) attributes {dimension_semantics = [#tpu.dimension_semantics<parallel>], iteration_bounds = array<i64: 2>, scalar_prefetch = 0 : i64, scratch_operands = 0 : i64, tpu.core_type = #tpu.core_type<tc>, window_params = [{pipeline_mode = #tpu.pipeline_mode<synchronous>, transform_indices = @transform_0, window_bounds = array<i64: 96, 512>}, {transform_indices = @transform_1, window_bounds = array<i64: 16, 96>}, {transform_indices = @transform_2, window_bounds = array<i64: 16, 1>}, {transform_indices = @transform_3, window_bounds = array<i64: 16, 1>}, {transform_indices = @transform_4, window_bounds = array<i64: 16, 512>}]} {
    %c0 = arith.constant 0 : index
    %c0_0 = arith.constant 0 : index
    %0 = vector.load %arg2[%c0, %c0_0] : memref<16x96xbf16, #tpu.memory_space<vmem>>, vector<16x96xbf16>
    %c0_1 = arith.constant 0 : index
    %c0_2 = arith.constant 0 : index
    %1 = vector.load %arg1[%c0_1, %c0_2] : memref<96x512xbf16, #tpu.memory_space<vmem>>, vector<96x512xbf16>
    %cst = arith.constant dense<0.000000e+00> : vector<16x512xf32>
    %2 = tpu.matmul %0, %1, %cst {dimension_numbers = #tpu.dot_dimension_numbers<[1], [0], [0], [1], [0, 0, 1, 1], [], []>} : vector<16x96xbf16>, vector<96x512xbf16>, vector<16x512xf32> -> vector<16x512xf32>
    %cst_3 = arith.constant dense<0.000000e+00> : vector<16xf32>
    %3 = vector.multi_reduction <add>, %2, %cst_3 [1] : vector<16x512xf32> to vector<16xf32>
    %4 = vector.shape_cast %3 : vector<16xf32> to vector<16x1xf32>
    %cst_4 = arith.constant 0.001953125 : f32
    %5 = vector.broadcast %cst_4 : f32 to vector<16x1xf32>
    %6 = arith.mulf %4, %5 : vector<16x1xf32>
    %7 = vector.broadcast %6 : vector<16x1xf32> to vector<16x512xf32>
    %8 = arith.subf %2, %7 : vector<16x512xf32>
    %9 = arith.mulf %8, %8 : vector<16x512xf32>
    %cst_5 = arith.constant dense<0.000000e+00> : vector<16xf32>
    %10 = vector.multi_reduction <add>, %9, %cst_5 [1] : vector<16x512xf32> to vector<16xf32>
    %11 = vector.shape_cast %10 : vector<16xf32> to vector<16x1xf32>
    %cst_6 = arith.constant 0.001953125 : f32
    %12 = vector.broadcast %cst_6 : f32 to vector<16x1xf32>
    %13 = arith.mulf %11, %12 : vector<16x1xf32>
    %cst_7 = arith.constant 9.99999974E-6 : f32
    %14 = vector.broadcast %cst_7 : f32 to vector<16x1xf32>
    %15 = arith.addf %13, %14 : vector<16x1xf32>
    %16 = math.rsqrt %15 : vector<16x1xf32>
    %17 = vector.broadcast %6 : vector<16x1xf32> to vector<16x512xf32>
    %18 = arith.subf %2, %17 : vector<16x512xf32>
    %c0_8 = arith.constant 0 : index
    %c0_9 = arith.constant 0 : index
    %19 = vector.load %arg3[%c0_8, %c0_9] : memref<16x1xf32, #tpu.memory_space<vmem>>, vector<16x1xf32>
    %20 = arith.mulf %16, %19 : vector<16x1xf32>
    %21 = vector.broadcast %20 : vector<16x1xf32> to vector<16x512xf32>
    %22 = arith.mulf %18, %21 : vector<16x512xf32>
    %c0_10 = arith.constant 0 : index
    %c0_11 = arith.constant 0 : index
    %23 = vector.load %arg4[%c0_10, %c0_11] : memref<16x1xf32, #tpu.memory_space<vmem>>, vector<16x1xf32>
    %24 = vector.broadcast %23 : vector<16x1xf32> to vector<16x512xf32>
    %25 = arith.addf %22, %24 : vector<16x512xf32>
    %26 = arith.truncf %25 : vector<16x512xf32> to vector<16x512xbf16>
    %c0_12 = arith.constant 0 : index
    %c0_13 = arith.constant 0 : index
    %27 = vector.load %arg5[%c0_12, %c0_13] : memref<16x512xbf16, #tpu.memory_space<vmem>>, vector<16x512xbf16>
    tpu.vector_store %arg5[%c0_12, %c0_13], %26 {strides = array<i32>} : memref<16x512xbf16, #tpu.memory_space<vmem>>, vector<16x512xbf16>,
    return
  }
  func.func @transform_0(%arg0: i32) -> (i32, i32) {
    %c0_i32 = arith.constant 0 : i32
    %c0_i32_0 = arith.constant 0 : i32
    %c0_i32_1 = arith.constant 0 : i32
    return %c0_i32, %c0_i32_0 : i32, i32
  }
  func.func @transform_1(%arg0: i32) -> (i32, i32) {
    %c0_i32 = arith.constant 0 : i32
    %c0_i32_0 = arith.constant 0 : i32
    return %arg0, %c0_i32 : i32, i32
  }
  func.func @transform_2(%arg0: i32) -> (i32, i32) {
    %c0_i32 = arith.constant 0 : i32
    %c0_i32_0 = arith.constant 0 : i32
    return %arg0, %c0_i32 : i32, i32
  }
  func.func @transform_3(%arg0: i32) -> (i32, i32) {
    %c0_i32 = arith.constant 0 : i32
    %c0_i32_0 = arith.constant 0 : i32
    return %arg0, %c0_i32 : i32, i32
  }
  func.func @transform_4(%arg0: i32) -> (i32, i32) {
    %c0_i32 = arith.constant 0 : i32
    %c0_i32_0 = arith.constant 0 : i32
    return %arg0, %c0_i32 : i32, i32
  }
}

module attributes {stable_mosaic.version = 11 : i64} {
  func.func @gemm_bn_kernel(%arg0: i32, %arg1: memref<32x512xbf16, #tpu.memory_space<vmem>>, %arg2: memref<16x32xbf16, #tpu.memory_space<vmem>>, %arg3: memref<16x1xf32, #tpu.memory_space<vmem>>, %arg4: memref<16x1xf32, #tpu.memory_space<vmem>>, %arg5: memref<16x512xbf16, #tpu.memory_space<vmem>>) attributes {dimension_semantics = [#tpu.dimension_semantics<parallel>], iteration_bounds = array<i64: 5>, scalar_prefetch = 0 : i64, scratch_operands = 0 : i64, tpu.core_type = #tpu.core_type<tc>, window_params = [{pipeline_mode = #tpu.pipeline_mode<synchronous>, transform_indices = @transform_0, window_bounds = array<i64: 32, 512>}, {transform_indices = @transform_1, window_bounds = array<i64: 16, 32>}, {transform_indices = @transform_2, window_bounds = array<i64: 16, 1>}, {transform_indices = @transform_3, window_bounds = array<i64: 16, 1>}, {transform_indices = @transform_4, window_bounds = array<i64: 16, 512>}]} {
    %c0 = arith.constant 0 : index
    %c0_0 = arith.constant 0 : index
    %0 = vector.load %arg2[%c0, %c0_0] : memref<16x32xbf16, #tpu.memory_space<vmem>>, vector<16x32xbf16>
    %c0_1 = arith.constant 0 : index
    %c0_2 = arith.constant 0 : index
    %1 = vector.load %arg1[%c0_1, %c0_2] : memref<32x512xbf16, #tpu.memory_space<vmem>>, vector<32x512xbf16>
    %cst = arith.constant dense<0.000000e+00> : vector<16x512xf32>
    %2 = tpu.matmul %0, %1, %cst {dimension_numbers = #tpu.dot_dimension_numbers<[1], [0], [0], [1], [0, 0, 1, 1], [], []>} : vector<16x32xbf16>, vector<32x512xbf16>, vector<16x512xf32> -> vector<16x512xf32>
    %cst_3 = arith.constant dense<0.000000e+00> : vector<16xf32>
    %3 = vector.multi_reduction <add>, %2, %cst_3 [1] : vector<16x512xf32> to vector<16xf32>
    %4 = vector.shape_cast %3 : vector<16xf32> to vector<16x1xf32>
    %cst_4 = arith.constant 0.001953125 : f32
    %5 = vector.broadcast %cst_4 : f32 to vector<16x1xf32>
    %6 = arith.mulf %4, %5 : vector<16x1xf32>
    %7 = vector.broadcast %6 : vector<16x1xf32> to vector<16x512xf32>
    %8 = arith.subf %2, %7 : vector<16x512xf32>
    %9 = arith.mulf %8, %8 : vector<16x512xf32>
    %cst_5 = arith.constant dense<0.000000e+00> : vector<16xf32>
    %10 = vector.multi_reduction <add>, %9, %cst_5 [1] : vector<16x512xf32> to vector<16xf32>
    %11 = vector.shape_cast %10 : vector<16xf32> to vector<16x1xf32>
    %cst_6 = arith.constant 0.001953125 : f32
    %12 = vector.broadcast %cst_6 : f32 to vector<16x1xf32>
    %13 = arith.mulf %11, %12 : vector<16x1xf32>
    %cst_7 = arith.constant 9.99999974E-6 : f32
    %14 = vector.broadcast %cst_7 : f32 to vector<16x1xf32>
    %15 = arith.addf %13, %14 : vector<16x1xf32>
    %16 = math.rsqrt %15 : vector<16x1xf32>
    %17 = vector.broadcast %6 : vector<16x1xf32> to vector<16x512xf32>
    %18 = arith.subf %2, %17 : vector<16x512xf32>
    %c0_8 = arith.constant 0 : index
    %c0_9 = arith.constant 0 : index
    %19 = vector.load %arg3[%c0_8, %c0_9] : memref<16x1xf32, #tpu.memory_space<vmem>>, vector<16x1xf32>
    %20 = arith.mulf %16, %19 : vector<16x1xf32>
    %21 = vector.broadcast %20 : vector<16x1xf32> to vector<16x512xf32>
    %22 = arith.mulf %18, %21 : vector<16x512xf32>
    %c0_10 = arith.constant 0 : index
    %c0_11 = arith.constant 0 : index
    %23 = vector.load %arg4[%c0_10, %c0_11] : memref<16x1xf32, #tpu.memory_space<vmem>>, vector<16x1xf32>
    %24 = vector.broadcast %23 : vector<16x1xf32> to vector<16x512xf32>
    %25 = arith.addf %22, %24 : vector<16x512xf32>
    %26 = arith.truncf %25 : vector<16x512xf32> to vector<16x512xbf16>
    %c0_12 = arith.constant 0 : index
    %c0_13 = arith.constant 0 : index
    %27 = vector.load %arg5[%c0_12, %c0_13] : memref<16x512xbf16, #tpu.memory_space<vmem>>, vector<16x512xbf16>
    tpu.vector_store %arg5[%c0_12, %c0_13], %26 {strides = array<i32>} : memref<16x512xbf16, #tpu.memory_space<vmem>>, vector<16x512xbf16>,
    return
  }
  func.func @transform_0(%arg0: i32) -> (i32, i32) {
    %c0_i32 = arith.constant 0 : i32
    %c0_i32_0 = arith.constant 0 : i32
    %c0_i32_1 = arith.constant 0 : i32
    return %c0_i32, %c0_i32_0 : i32, i32
  }
  func.func @transform_1(%arg0: i32) -> (i32, i32) {
    %c0_i32 = arith.constant 0 : i32
    %c0_i32_0 = arith.constant 0 : i32
    return %arg0, %c0_i32 : i32, i32
  }
  func.func @transform_2(%arg0: i32) -> (i32, i32) {
    %c0_i32 = arith.constant 0 : i32
    %c0_i32_0 = arith.constant 0 : i32
    return %arg0, %c0_i32 : i32, i32
  }
  func.func @transform_3(%arg0: i32) -> (i32, i32) {
    %c0_i32 = arith.constant 0 : i32
    %c0_i32_0 = arith.constant 0 : i32
    return %arg0, %c0_i32 : i32, i32
  }
  func.func @transform_4(%arg0: i32) -> (i32, i32) {
    %c0_i32 = arith.constant 0 : i32
    %c0_i32_0 = arith.constant 0 : i32
    return %arg0, %c0_i32 : i32, i32
  }
}

module attributes {stable_mosaic.version = 11 : i64} {
  func.func @attn_hw_kernel(%arg0: i32, %arg1: memref<1x16x64xbf16, #tpu.memory_space<vmem>>, %arg2: memref<1x16x64xbf16, #tpu.memory_space<vmem>>, %arg3: memref<1x16x512xbf16, #tpu.memory_space<vmem>>, %arg4: memref<1x16x64xbf16, #tpu.memory_space<vmem>>, %arg5: memref<1x16x64xbf16, #tpu.memory_space<vmem>>, %arg6: memref<1x16x512xbf16, #tpu.memory_space<vmem>>, %arg7: memref<1x16x512xbf16, #tpu.memory_space<vmem>>, %arg8: memref<1x16x512xbf16, #tpu.memory_space<vmem>>) attributes {dimension_semantics = [#tpu.dimension_semantics<parallel>], iteration_bounds = array<i64: 2>, scalar_prefetch = 0 : i64, scratch_operands = 0 : i64, tpu.core_type = #tpu.core_type<tc>, window_params = [{transform_indices = @transform_0, window_bounds = array<i64: 1, 16, 64>}, {transform_indices = @transform_1, window_bounds = array<i64: 1, 16, 64>}, {transform_indices = @transform_2, window_bounds = array<i64: 1, 16, 512>}, {transform_indices = @transform_3, window_bounds = array<i64: 1, 16, 64>}, {transform_indices = @transform_4, window_bounds = array<i64: 1, 16, 64>}, {transform_indices = @transform_5, window_bounds = array<i64: 1, 16, 512>}, {transform_indices = @transform_6, window_bounds = array<i64: 1, 16, 512>}, {transform_indices = @transform_7, window_bounds = array<i64: 1, 16, 512>}]} {
    %c0 = arith.constant 0 : index
    %c0_0 = arith.constant 0 : index
    %c0_1 = arith.constant 0 : index
    %0 = vector.load %arg1[%c0, %c0_0, %c0_1] : memref<1x16x64xbf16, #tpu.memory_space<vmem>>, vector<1x16x64xbf16>
    %1 = vector.shape_cast %0 : vector<1x16x64xbf16> to vector<16x64xbf16>
    %c0_2 = arith.constant 0 : index
    %c0_3 = arith.constant 0 : index
    %c0_4 = arith.constant 0 : index
    %2 = vector.load %arg2[%c0_2, %c0_3, %c0_4] : memref<1x16x64xbf16, #tpu.memory_space<vmem>>, vector<1x16x64xbf16>
    %3 = vector.shape_cast %2 : vector<1x16x64xbf16> to vector<16x64xbf16>
    %c0_5 = arith.constant 0 : index
    %c0_6 = arith.constant 0 : index
    %c0_7 = arith.constant 0 : index
    %4 = vector.load %arg3[%c0_5, %c0_6, %c0_7] : memref<1x16x512xbf16, #tpu.memory_space<vmem>>, vector<1x16x512xbf16>
    %5 = vector.shape_cast %4 : vector<1x16x512xbf16> to vector<16x512xbf16>
    %cst = arith.constant dense<0.000000e+00> : vector<16x16xf32>
    %6 = tpu.matmul %1, %3, %cst {dimension_numbers = #tpu.dot_dimension_numbers<[1], [1], [0], [0], [0, 0, 1, 0], [], []>} : vector<16x64xbf16>, vector<16x64xbf16>, vector<16x16xf32> -> vector<16x16xf32>
    %cst_8 = arith.constant dense<0xFF800000> : vector<16xf32>
    %7 = vector.multi_reduction <maximumf>, %6, %cst_8 [1] : vector<16x16xf32> to vector<16xf32>
    %8 = vector.shape_cast %7 : vector<16xf32> to vector<16x1xf32>
    %9 = vector.broadcast %8 : vector<16x1xf32> to vector<16x16xf32>
    %10 = arith.subf %6, %9 : vector<16x16xf32>
    %11 = math.exp %10 : vector<16x16xf32>
    %cst_9 = arith.constant dense<0.000000e+00> : vector<16xf32>
    %12 = vector.multi_reduction <add>, %11, %cst_9 [1] : vector<16x16xf32> to vector<16xf32>
    %13 = vector.shape_cast %12 : vector<16xf32> to vector<16x1xf32>
    %14 = tpu.reciprocal %13 {approx = true} : vector<16x1xf32> -> vector<16x1xf32>
    %15 = vector.broadcast %14 : vector<16x1xf32> to vector<16x16xf32>
    %16 = arith.mulf %11, %15 : vector<16x16xf32>
    %17 = arith.truncf %16 : vector<16x16xf32> to vector<16x16xbf16>
    %cst_10 = arith.constant dense<0.000000e+00> : vector<16x512xf32>
    %18 = tpu.matmul %17, %5, %cst_10 {dimension_numbers = #tpu.dot_dimension_numbers<[1], [0], [0], [1], [0, 0, 1, 1], [], []>} : vector<16x16xbf16>, vector<16x512xbf16>, vector<16x512xf32> -> vector<16x512xf32>
    %c0_11 = arith.constant 0 : index
    %c0_12 = arith.constant 0 : index
    %c0_13 = arith.constant 0 : index
    %19 = vector.load %arg4[%c0_11, %c0_12, %c0_13] : memref<1x16x64xbf16, #tpu.memory_space<vmem>>, vector<1x16x64xbf16>
    %20 = vector.shape_cast %19 : vector<1x16x64xbf16> to vector<16x64xbf16>
    %c0_14 = arith.constant 0 : index
    %c0_15 = arith.constant 0 : index
    %c0_16 = arith.constant 0 : index
    %21 = vector.load %arg5[%c0_14, %c0_15, %c0_16] : memref<1x16x64xbf16, #tpu.memory_space<vmem>>, vector<1x16x64xbf16>
    %22 = vector.shape_cast %21 : vector<1x16x64xbf16> to vector<16x64xbf16>
    %c0_17 = arith.constant 0 : index
    %c0_18 = arith.constant 0 : index
    %c0_19 = arith.constant 0 : index
    %23 = vector.load %arg6[%c0_17, %c0_18, %c0_19] : memref<1x16x512xbf16, #tpu.memory_space<vmem>>, vector<1x16x512xbf16>
    %24 = vector.shape_cast %23 : vector<1x16x512xbf16> to vector<16x512xbf16>
    %cst_20 = arith.constant dense<0.000000e+00> : vector<16x16xf32>
    %25 = tpu.matmul %20, %22, %cst_20 {dimension_numbers = #tpu.dot_dimension_numbers<[1], [1], [0], [0], [0, 0, 1, 0], [], []>} : vector<16x64xbf16>, vector<16x64xbf16>, vector<16x16xf32> -> vector<16x16xf32>
    %cst_21 = arith.constant dense<0xFF800000> : vector<16xf32>
    %26 = vector.multi_reduction <maximumf>, %25, %cst_21 [1] : vector<16x16xf32> to vector<16xf32>
    %27 = vector.shape_cast %26 : vector<16xf32> to vector<16x1xf32>
    %28 = vector.broadcast %27 : vector<16x1xf32> to vector<16x16xf32>
    %29 = arith.subf %25, %28 : vector<16x16xf32>
    %30 = math.exp %29 : vector<16x16xf32>
    %cst_22 = arith.constant dense<0.000000e+00> : vector<16xf32>
    %31 = vector.multi_reduction <add>, %30, %cst_22 [1] : vector<16x16xf32> to vector<16xf32>
    %32 = vector.shape_cast %31 : vector<16xf32> to vector<16x1xf32>
    %33 = tpu.reciprocal %32 {approx = true} : vector<16x1xf32> -> vector<16x1xf32>
    %34 = vector.broadcast %33 : vector<16x1xf32> to vector<16x16xf32>
    %35 = arith.mulf %30, %34 : vector<16x16xf32>
    %36 = arith.truncf %35 : vector<16x16xf32> to vector<16x16xbf16>
    %cst_23 = arith.constant dense<0.000000e+00> : vector<16x512xf32>
    %37 = tpu.matmul %36, %24, %cst_23 {dimension_numbers = #tpu.dot_dimension_numbers<[1], [0], [0], [1], [0, 0, 1, 1], [], []>} : vector<16x16xbf16>, vector<16x512xbf16>, vector<16x512xf32> -> vector<16x512xf32>
    %c0_24 = arith.constant 0 : index
    %c0_25 = arith.constant 0 : index
    %c0_26 = arith.constant 0 : index
    %38 = vector.load %arg7[%c0_24, %c0_25, %c0_26] : memref<1x16x512xbf16, #tpu.memory_space<vmem>>, vector<1x16x512xbf16>
    %39 = vector.shape_cast %38 : vector<1x16x512xbf16> to vector<16x512xbf16>
    %40 = arith.extf %39 : vector<16x512xbf16> to vector<16x512xf32>
    %cst_27 = arith.constant 1.000000e-01 : f32
    %41 = vector.broadcast %cst_27 : f32 to vector<16x512xf32>
    %42 = arith.mulf %41, %18 : vector<16x512xf32>
    %cst_28 = arith.constant 1.000000e-01 : f32
    %43 = vector.broadcast %cst_28 : f32 to vector<16x512xf32>
    %44 = arith.mulf %43, %37 : vector<16x512xf32>
    %45 = arith.addf %42, %44 : vector<16x512xf32>
    %cst_29 = arith.constant 2.000000e+00 : f32
    %46 = vector.broadcast %cst_29 : f32 to vector<16x512xf32>
    %47 = arith.mulf %46, %40 : vector<16x512xf32>
    %48 = arith.addf %45, %47 : vector<16x512xf32>
    %49 = arith.truncf %48 : vector<16x512xf32> to vector<16x512xbf16>
    %c0_30 = arith.constant 0 : index
    %c0_31 = arith.constant 0 : index
    %c0_32 = arith.constant 0 : index
    %50 = vector.load %arg8[%c0_30, %c0_31, %c0_32] : memref<1x16x512xbf16, #tpu.memory_space<vmem>>, vector<1x16x512xbf16>
    %51 = vector.shape_cast %50 : vector<1x16x512xbf16> to vector<16x512xbf16>
    %52 = vector.shape_cast %49 : vector<16x512xbf16> to vector<1x16x512xbf16>
    tpu.vector_store %arg8[%c0_30, %c0_31, %c0_32], %52 {strides = array<i32>} : memref<1x16x512xbf16, #tpu.memory_space<vmem>>, vector<1x16x512xbf16>,
    return
  }
  func.func @transform_0(%arg0: i32) -> (i32, i32, i32) {
    %c0_i32 = arith.constant 0 : i32
    %c0_i32_0 = arith.constant 0 : i32
    %c0_i32_1 = arith.constant 0 : i32
    return %arg0, %c0_i32, %c0_i32_0 : i32, i32, i32
  }
  func.func @transform_1(%arg0: i32) -> (i32, i32, i32) {
    %c0_i32 = arith.constant 0 : i32
    %c0_i32_0 = arith.constant 0 : i32
    %c0_i32_1 = arith.constant 0 : i32
    return %arg0, %c0_i32, %c0_i32_0 : i32, i32, i32
  }
  func.func @transform_2(%arg0: i32) -> (i32, i32, i32) {
    %c0_i32 = arith.constant 0 : i32
    %c0_i32_0 = arith.constant 0 : i32
    %c0_i32_1 = arith.constant 0 : i32
    return %arg0, %c0_i32, %c0_i32_0 : i32, i32, i32
  }
  func.func @transform_3(%arg0: i32) -> (i32, i32, i32) {
    %c0_i32 = arith.constant 0 : i32
    %c0_i32_0 = arith.constant 0 : i32
    %c0_i32_1 = arith.constant 0 : i32
    return %arg0, %c0_i32, %c0_i32_0 : i32, i32, i32
  }
  func.func @transform_4(%arg0: i32) -> (i32, i32, i32) {
    %c0_i32 = arith.constant 0 : i32
    %c0_i32_0 = arith.constant 0 : i32
    %c0_i32_1 = arith.constant 0 : i32
    return %arg0, %c0_i32, %c0_i32_0 : i32, i32, i32
  }
  func.func @transform_5(%arg0: i32) -> (i32, i32, i32) {
    %c0_i32 = arith.constant 0 : i32
    %c0_i32_0 = arith.constant 0 : i32
    %c0_i32_1 = arith.constant 0 : i32
    return %arg0, %c0_i32, %c0_i32_0 : i32, i32, i32
  }
  func.func @transform_6(%arg0: i32) -> (i32, i32, i32) {
    %c0_i32 = arith.constant 0 : i32
    %c0_i32_0 = arith.constant 0 : i32
    %c0_i32_1 = arith.constant 0 : i32
    return %arg0, %c0_i32, %c0_i32_0 : i32, i32, i32
  }
  func.func @transform_7(%arg0: i32) -> (i32, i32, i32) {
    %c0_i32 = arith.constant 0 : i32
    %c0_i32_0 = arith.constant 0 : i32
    %c0_i32_1 = arith.constant 0 : i32
    return %arg0, %c0_i32, %c0_i32_0 : i32, i32, i32
  }
}

module attributes {stable_mosaic.version = 11 : i64} {
  func.func @gemm_bn_kernel(%arg0: i32, %arg1: memref<288x512xbf16, #tpu.memory_space<vmem>>, %arg2: memref<16x288xbf16, #tpu.memory_space<vmem>>, %arg3: memref<16x1xf32, #tpu.memory_space<vmem>>, %arg4: memref<16x1xf32, #tpu.memory_space<vmem>>, %arg5: memref<16x512xf32, #tpu.memory_space<vmem>>) attributes {dimension_semantics = [#tpu.dimension_semantics<parallel>], iteration_bounds = array<i64: 2>, scalar_prefetch = 0 : i64, scratch_operands = 0 : i64, tpu.core_type = #tpu.core_type<tc>, window_params = [{pipeline_mode = #tpu.pipeline_mode<synchronous>, transform_indices = @transform_0, window_bounds = array<i64: 288, 512>}, {transform_indices = @transform_1, window_bounds = array<i64: 16, 288>}, {transform_indices = @transform_2, window_bounds = array<i64: 16, 1>}, {transform_indices = @transform_3, window_bounds = array<i64: 16, 1>}, {transform_indices = @transform_4, window_bounds = array<i64: 16, 512>}]} {
    %c0 = arith.constant 0 : index
    %c0_0 = arith.constant 0 : index
    %0 = vector.load %arg2[%c0, %c0_0] : memref<16x288xbf16, #tpu.memory_space<vmem>>, vector<16x288xbf16>
    %c0_1 = arith.constant 0 : index
    %c0_2 = arith.constant 0 : index
    %1 = vector.load %arg1[%c0_1, %c0_2] : memref<288x512xbf16, #tpu.memory_space<vmem>>, vector<288x512xbf16>
    %cst = arith.constant dense<0.000000e+00> : vector<16x512xf32>
    %2 = tpu.matmul %0, %1, %cst {dimension_numbers = #tpu.dot_dimension_numbers<[1], [0], [0], [1], [0, 0, 1, 1], [], []>} : vector<16x288xbf16>, vector<288x512xbf16>, vector<16x512xf32> -> vector<16x512xf32>
    %cst_3 = arith.constant dense<0.000000e+00> : vector<16xf32>
    %3 = vector.multi_reduction <add>, %2, %cst_3 [1] : vector<16x512xf32> to vector<16xf32>
    %4 = vector.shape_cast %3 : vector<16xf32> to vector<16x1xf32>
    %cst_4 = arith.constant 0.001953125 : f32
    %5 = vector.broadcast %cst_4 : f32 to vector<16x1xf32>
    %6 = arith.mulf %4, %5 : vector<16x1xf32>
    %7 = vector.broadcast %6 : vector<16x1xf32> to vector<16x512xf32>
    %8 = arith.subf %2, %7 : vector<16x512xf32>
    %9 = arith.mulf %8, %8 : vector<16x512xf32>
    %cst_5 = arith.constant dense<0.000000e+00> : vector<16xf32>
    %10 = vector.multi_reduction <add>, %9, %cst_5 [1] : vector<16x512xf32> to vector<16xf32>
    %11 = vector.shape_cast %10 : vector<16xf32> to vector<16x1xf32>
    %cst_6 = arith.constant 0.001953125 : f32
    %12 = vector.broadcast %cst_6 : f32 to vector<16x1xf32>
    %13 = arith.mulf %11, %12 : vector<16x1xf32>
    %cst_7 = arith.constant 9.99999974E-6 : f32
    %14 = vector.broadcast %cst_7 : f32 to vector<16x1xf32>
    %15 = arith.addf %13, %14 : vector<16x1xf32>
    %16 = math.rsqrt %15 : vector<16x1xf32>
    %17 = vector.broadcast %6 : vector<16x1xf32> to vector<16x512xf32>
    %18 = arith.subf %2, %17 : vector<16x512xf32>
    %c0_8 = arith.constant 0 : index
    %c0_9 = arith.constant 0 : index
    %19 = vector.load %arg3[%c0_8, %c0_9] : memref<16x1xf32, #tpu.memory_space<vmem>>, vector<16x1xf32>
    %20 = arith.mulf %16, %19 : vector<16x1xf32>
    %21 = vector.broadcast %20 : vector<16x1xf32> to vector<16x512xf32>
    %22 = arith.mulf %18, %21 : vector<16x512xf32>
    %c0_10 = arith.constant 0 : index
    %c0_11 = arith.constant 0 : index
    %23 = vector.load %arg4[%c0_10, %c0_11] : memref<16x1xf32, #tpu.memory_space<vmem>>, vector<16x1xf32>
    %24 = vector.broadcast %23 : vector<16x1xf32> to vector<16x512xf32>
    %25 = arith.addf %22, %24 : vector<16x512xf32>
    %c0_12 = arith.constant 0 : index
    %c0_13 = arith.constant 0 : index
    %26 = vector.load %arg5[%c0_12, %c0_13] : memref<16x512xf32, #tpu.memory_space<vmem>>, vector<16x512xf32>
    tpu.vector_store %arg5[%c0_12, %c0_13], %25 {strides = array<i32>} : memref<16x512xf32, #tpu.memory_space<vmem>>, vector<16x512xf32>,
    return
  }
  func.func @transform_0(%arg0: i32) -> (i32, i32) {
    %c0_i32 = arith.constant 0 : i32
    %c0_i32_0 = arith.constant 0 : i32
    %c0_i32_1 = arith.constant 0 : i32
    return %c0_i32, %c0_i32_0 : i32, i32
  }
  func.func @transform_1(%arg0: i32) -> (i32, i32) {
    %c0_i32 = arith.constant 0 : i32
    %c0_i32_0 = arith.constant 0 : i32
    return %arg0, %c0_i32 : i32, i32
  }
  func.func @transform_2(%arg0: i32) -> (i32, i32) {
    %c0_i32 = arith.constant 0 : i32
    %c0_i32_0 = arith.constant 0 : i32
    return %arg0, %c0_i32 : i32, i32
  }
  func.func @transform_3(%arg0: i32) -> (i32, i32) {
    %c0_i32 = arith.constant 0 : i32
    %c0_i32_0 = arith.constant 0 : i32
    return %arg0, %c0_i32 : i32, i32
  }
  func.func @transform_4(%arg0: i32) -> (i32, i32) {
    %c0_i32 = arith.constant 0 : i32
    %c0_i32_0 = arith.constant 0 : i32
    return %arg0, %c0_i32 : i32, i32
  }
}

</mosaic_0001>

<bundles_post_ra>
// kernel: _lambda_.6
= control target key start
LH: loop header
LB: loop body
LE: loop exit
PB: predicated region body
PF: predicated region fallthrough
CT: control target
= control target key end

     0   :  { %s656_s15 = smov 0   ;;  %s687_s0 = inlined_call_operand.vmem [shape: bf16[4,512], index: 0, kind: input, shape index: {}]   ;;  %s688_s1 = inlined_call_operand.vmem [shape: bf16[32,4], index: 1, kind: input, shape index: {}]   ;;  %s689_s2 = inlined_call_operand.vmem [shape: f32[32,1], index: 2, kind: input, shape index: {}]   ;;  %s690_s3 = inlined_call_operand.vmem [shape: f32[32,1], index: 3, kind: input, shape index: {}]   ;;  %s691_s4 = inlined_call_operand.vmem [shape: bf16[32,512], index: 4, kind: output, shape index: {}]  }
   0x1 LB: > { %s573_s16 = sadd.s32 4294967295, %s627_s15   ;;  %p577_p0 = scmp.ge.s32.totalorder %s627_s15, 1  ;;  %s627_s15 = sphi %s656_s15, %s14_s15  }
   0x2   : > { %p185_p1 = scmp.lt.s32.totalorder %s627_s15, 3 }
   0x4   : > { %p186_p2 = pnand %p577_p0, %p185_p1 }
   0x5   : > { %v250_v0 = vld [vmem:[%s687_s0] sm:$0xff] (!%p186_p2)  ;;  %v261_v1 = vlaneseq (!%p186_p2)  ;;  %s578_s19 = sshll.u32 (!%p186_p2), %s573_s16, 1  ;;  %v629_v2 = vmov (!%p186_p2), 1983009808   ;;  %v630_v4 = vmov (!%p186_p2), 0   ;;  %vm278_vm0 = vcmask (!%p186_p2), 1041408  }
   0x6   : > { %189 = sbr.rel (%p186_p2) target bundleno = 693 (0x2b5), region = 36  ;;  %v259_v3 = vunpack.c.l.s4 (!%p186_p2), %v629_v2  ;;  %323 = vmatprep.mubr.bf16.mxu0 (!%p186_p2), %v630_v4  ;;  %366 = vmatprep.mubr.bf16.mxu1 (!%p186_p2), %v630_v4  ;;  %p223_p3 = scmp.lt.s32.totalorder (!%p186_p2), %s578_s19, 3  ;;  %v257_v7 = vcombine.high (!%p186_p2), %v250_v0, %v250_v0  ;;  %vm274_vm1 = vcmask (!%p186_p2), 31744  }
   0x7   : > { %v262_v5 = vshrl.u32 (!%p186_p2), %v261_v1, 7  ;;  %614 = vset.pattern.permute.xlu1 (!%p186_p2), %v630_v4  ;;  %613 = vset.pattern.permute.xlu0 (!%p186_p2), %v630_v4 }
   0x8   : > { %v260_v6 = vunpack.c.0.s8 (!%p186_p2), %v259_v3 }
   0xa   : > { %v263_v8 = vsub.s32 (!%p186_p2), %v260_v6, %v262_v5 }
   0xc   : > { %v264_v9 = vrot.slane (!%p186_p2), %v250_v0, %v263_v8  ;;  %v271_v10 = vrot.slane (!%p186_p2), %v257_v7, %v263_v8 }
   0xd   : > { %s693_s19 = smov (!%p223_p3, %s578_s19), 3 }
   0xe   : > { %s579_s20 = sshll.u32 %s693_s19, 2  ;;  %v272_v11 = vcombine.high %v264_v9, %v264_v9  ;;  %v273_v12 = vcombine.high %v271_v10, %v271_v10  ;;  %v280_v13 = vsel %vm278_vm0, %v264_v9, 0  ;;  %v286_v14 = vsel %vm278_vm0, %v271_v10, 0  ;;  %s581_s24 = sshll.u32 %s693_s19, 3 }
   0xf   : > { %s226_s23 = scalar_lea.vmem %s688_s1, %s579_s20  ;;  %s238_s27 = scalar_lea.vmem %s690_s3, %s581_s24 }
  0x10   : > { %588 = vmatprep.subr.msk.bf16.mxu0 %vm278_vm0, %v272_v11  ;;  %590 = vmatprep.subr.msk.bf16.mxu1 %vm278_vm0, %v273_v12  ;;  %v616_v15 = vld [vmem:[%s226_s23] sm:$0xff]   ;;  %s232_s30 = scalar_lea.vmem %s689_s2, %s581_s24  ;;  %v444_v5 = vld [vmem:[%s238_s27 + $0x8] sm:$0xff]  ;;  %s598_s5 = sshll.u32 %s693_s19, 4 }
  0x11   : > { %292 = vmatpush1.bf16.msra.mxu0 %v280_v13  ;;  %335 = vmatpush1.bf16.msra.mxu1 %v286_v14  ;;  %v443_v56 = vld [vmem:[%s238_s27] sm:$0xff]  ;;  %v422_v2 = vld [vmem:[%s232_s30 + $0x8] sm:$0xff]  ;;  %s245_s8 = scalar_lea.vmem %s691_s4, %s598_s5 }
  0x12   : > { %v421_v63 = vld [vmem:[%s232_s30] sm:$0xff] }
  0x14   : > { %589 = vmatmul.mubr.msk.bf16.vlgmr.msra.gmra.mrb[0].mxu0 %vm274_vm1, %v616_v15  ;;  %591 = vmatmul.mubr.msk.bf16.vlgmr.msra.gmra.mrb[0].mxu1 %vm274_vm1, %v616_v15 }
  0xe7   : > { %v325_v16 = vpop.f32.mrb[0].mxu0  ;;  %v368_v17 = vpop.f32.mrb[0].mxu1 }
  0xe8   : > { %v327_v18 = vpop.f32.mrb[1].mxu0  ;;  %v370_v19 = vpop.f32.mrb[1].mxu1 }
  0xe9   : > { %v377_v20 = vadd.f32 %v327_v18, %v325_v16  ;;  %v329_v21 = vpop.f32.mrb[2].mxu0  ;;  %v372_v22 = vpop.f32.mrb[2].mxu1 }
  0xea   : > { %v331_v23 = vpop.f32.mrb[3].mxu0  ;;  %v374_v24 = vpop.f32.mrb[3].mxu1 }
  0xeb   : > { %v382_v25 = vadd.f32 %v331_v23, %v329_v21  ;;  %v378_v26 = vadd.f32 %v377_v20, %v368_v17 }
  0xed   : > { %v383_v27 = vadd.f32 %v382_v25, %v372_v22  ;;  %v379_v28 = vadd.f32 %v378_v26, %v370_v19 }
  0xef   : > { %v384_v29 = vadd.f32 %v383_v27, %v374_v24  ;;  %380 = vadd.xlane.f32.xlu0 %v379_v28 }
  0xf3   : > { %385 = vadd.xlane.f32.xlu0 %v384_v29 }
 0x17c   : > { %v381_v30 = vpop.xlane.xlu0 %380 }
 0x17d   : > { %v387_v31 = vmul.f32 0.001953125, %v381_v30 }
 0x17f   : > { %v389_v32 = vsub.f32 %v325_v16, %v387_v31  ;;  %v390_v33 = vsub.f32 %v327_v18, %v387_v31  ;;  %v391_v34 = vsub.f32 %v368_v17, %v387_v31  ;;  %v392_v36 = vsub.f32 %v370_v19, %v387_v31 }
 0x180   : > { %v386_v35 = vpop.xlane.xlu0 %385 }
 0x181   : > { %v388_v37 = vmul.f32 0.001953125, %v386_v35  ;;  %v397_v38 = vmul.f32 %v389_v32, %v389_v32  ;;  %v398_v39 = vmul.f32 %v390_v33, %v390_v33  ;;  %v399_v40 = vmul.f32 %v391_v34, %v391_v34 }
 0x182   : > { %v400_v45 = vmul.f32 %v392_v36, %v392_v36 }
 0x183   : > { %v393_v41 = vsub.f32 %v329_v21, %v388_v37  ;;  %v394_v42 = vsub.f32 %v331_v23, %v388_v37  ;;  %v405_v43 = vadd.f32 %v398_v39, %v397_v38  ;;  %v395_v44 = vsub.f32 %v372_v22, %v388_v37 }
 0x184   : > { %v396_v47 = vsub.f32 %v374_v24, %v388_v37 }
 0x185   : > { %v406_v46 = vadd.f32 %v405_v43, %v399_v40  ;;  %v401_v48 = vmul.f32 %v393_v41, %v393_v41  ;;  %v402_v49 = vmul.f32 %v394_v42, %v394_v42  ;;  %v403_v51 = vmul.f32 %v395_v44, %v395_v44 }
 0x186   : > { %v404_v53 = vmul.f32 %v396_v47, %v396_v47 }
 0x187   : > { %v407_v50 = vadd.f32 %v406_v46, %v400_v45  ;;  %v410_v52 = vadd.f32 %v402_v49, %v401_v48 }
 0x189   : > { %408 = vadd.xlane.f32.xlu1 %v407_v50  ;;  %v411_v54 = vadd.f32 %v410_v52, %v403_v51 }
 0x18b   : > { %v412_v55 = vadd.f32 %v411_v54, %v404_v53 }
 0x18d   : > { %413 = vadd.xlane.f32.xlu1 %v412_v55 }
 0x19e   : > { %447 = vperm.xlu1 %614, %v443_v56  }
 0x216   : > { %v409_v57 = vpop.xlane.xlu1 %408 }
 0x217   : > { %v415_v58 = vmul.f32 0.001953125, %v409_v57 }
 0x219   : > { %v417_v59 = vadd.f32 1e-05, %v415_v58 }
 0x21a   : > { %v414_v60 = vpop.xlane.xlu1 %413 }
 0x21b   : > { %617 = vrsqrt.f32 %v417_v59  ;;  %v416_v61 = vmul.f32 0.001953125, %v414_v60 }
 0x21d   : > { %v418_v62 = vadd.f32 1e-05, %v416_v61 }
 0x21e   : > { %v448_v6 = vpop.permute.xlu1 %447 }
 0x21f   : > { %619 = vrsqrt.f32 %v418_v62 }
 0x225   : > { %v618_v0 = vpop.eup %617 }
 0x226   : > { %v423_v1 = vmul.f32 %v618_v0, %v421_v63 }
 0x228   : > { %427 = vperm.xlu0 %613, %v423_v1  }
 0x229   : > { %v620_v3 = vpop.eup %619 }
 0x22a   : > { %v424_v4 = vmul.f32 %v620_v3, %v422_v2 }
 0x22c   : > { %432 = vperm.xlu1 %614, %v424_v4  }
 0x230   : > { %452 = vperm.xlu1 %614, %v444_v5  }
 0x2a7   : > { %v428_v7 = vpop.permute.xlu0 %427 }
 0x2a8   : > { %v435_v8 = vmul.f32 %v428_v7, %v389_v32  ;;  %v436_v9 = vmul.f32 %v428_v7, %v390_v33  ;;  %v437_v10 = vmul.f32 %v428_v7, %v391_v34  ;;  %v438_v11 = vmul.f32 %v428_v7, %v392_v36 }
 0x2aa   : > { %v455_v12 = vadd.f32 %v448_v6, %v435_v8  ;;  %v456_v13 = vadd.f32 %v448_v6, %v436_v9  ;;  %v457_v14 = vadd.f32 %v448_v6, %v437_v10  ;;  %v458_v15 = vadd.f32 %v448_v6, %v438_v11 }
 0x2ab   : > { %v433_v16 = vpop.permute.xlu1 %432 }
 0x2ac   : > { %v599_v17 = vpack.c.bf16 %v456_v13, %v455_v12  ;;  %v600_v18 = vpack.c.bf16 %v458_v15, %v457_v14  ;;  %v439_v19 = vmul.f32 %v433_v16, %v393_v41  ;;  %v440_v20 = vmul.f32 %v433_v16, %v394_v42 }
 0x2ad   : > { %v441_v21 = vmul.f32 %v433_v16, %v395_v44  ;;  %v442_v22 = vmul.f32 %v433_v16, %v396_v47 }
 0x2ae   : > { %487 = vst [vmem:[%s245_s8] sm:$0xff] %v599_v17  ;;  %488 = vst [vmem:[%s245_s8 + $0x8] sm:$0xff] %v600_v18 }
 0x2af   : > { %v453_v23 = vpop.permute.xlu1 %452 }
 0x2b0   : > { %v459_v24 = vadd.f32 %v453_v23, %v439_v19  ;;  %v460_v25 = vadd.f32 %v453_v23, %v440_v20  ;;  %v461_v26 = vadd.f32 %v453_v23, %v441_v21  ;;  %v462_v27 = vadd.f32 %v453_v23, %v442_v22 }
 0x2b2   : > { %v601_v28 = vpack.c.bf16 %v460_v25, %v459_v24  ;;  %v602_v29 = vpack.c.bf16 %v462_v27, %v461_v26 }
 0x2b4   : > { %489 = vst [vmem:[%s245_s8 + $0x10] sm:$0xff] %v601_v28  ;;  %490 = vst [vmem:[%s245_s8 + $0x18] sm:$0xff] %v602_v29 }
 0x2b5 PF: > { %s14_s15 = sadd.s32 1, %s627_s15  }
 0x2b6   : > { %p11_p4 = scmp.ge.s32.totalorder %s14_s15, 4  }
 0x2b8   :  { %13 = sbr.rel (!%p11_p4) target bundleno = 1 (0x1), region = 72 }

// kernel: _lambda_.7
= control target key start
LH: loop header
LB: loop body
LE: loop exit
PB: predicated region body
PF: predicated region fallthrough
CT: control target
= control target key end

     0   :  { %s823_s15 = smov 0   ;;  %s923_s0 = inlined_call_operand.vmem [shape: bf16[96,512], index: 0, kind: input, shape index: {}]   ;;  %s924_s1 = inlined_call_operand.vmem [shape: bf16[32,96], index: 1, kind: input, shape index: {}]   ;;  %s925_s2 = inlined_call_operand.vmem [shape: f32[32,1], index: 2, kind: input, shape index: {}]   ;;  %s926_s3 = inlined_call_operand.vmem [shape: f32[32,1], index: 3, kind: input, shape index: {}]   ;;  %s927_s4 = inlined_call_operand.vmem [shape: bf16[32,512], index: 4, kind: output, shape index: {}]  }
   0x1 LB: > { %s685_s16 = sadd.s32 4294967295, %s795_s15   ;;  %p689_p0 = scmp.ge.s32.totalorder %s795_s15, 1  ;;  %s795_s15 = sphi %s823_s15, %s14_s15  }
   0x2   : > { %p185_p1 = scmp.lt.s32.totalorder %s795_s15, 3 }
   0x4   : > { %p186_p2 = pnand %p689_p0, %p185_p1 }
   0x5   : > { %v748_v0 = vld [vmem:[%s923_s0 + $0x4] ss:$16 sps:$4 sm:$0xff] (!%p186_p2)   ;;  %v750_v1 = vld [vmem:[%s923_s0 + $0xc] ss:$16 sps:$4 sm:$0xff] (!%p186_p2)   ;;  %v797_v2 = vmov (!%p186_p2), 0   ;;  %s690_s21 = sshll.u32 (!%p186_p2), %s685_s16, 1 }
   0x6   : > { %189 = sbr.rel (%p186_p2) target bundleno = 705 (0x2c1), region = 36  ;;  %435 = vmatprep.mubr.bf16.mxu0 (!%p186_p2), %v797_v2  ;;  %478 = vmatprep.mubr.bf16.mxu1 (!%p186_p2), %v797_v2  ;;  %v752_v3 = vld [vmem:[%s923_s0] ss:$16 sps:$4 sm:$0xff] (!%p186_p2)   ;;  %v753_v4 = vld [vmem:[%s923_s0 + $0x8] ss:$16 sps:$4 sm:$0xff] (!%p186_p2)   ;;  %p223_p3 = scmp.lt.s32.totalorder (!%p186_p2), %s690_s21, 3 }
   0x7   : > { %403 = vmatprep.subr.bf16.mxu0 (!%p186_p2), %v748_v0  ;;  %747 = vset.pattern.permute.xlu1 (!%p186_p2), %v797_v2  ;;  %v754_v5 = vld [vmem:[%s923_s0 + $0x24] ss:$16 sps:$4 sm:$0xff] (!%p186_p2)   ;;  %v756_v6 = vld [vmem:[%s923_s0 + $0x2c] ss:$16 sps:$4 sm:$0xff] (!%p186_p2)   ;;  %v758_v7 = vld [vmem:[%s923_s0 + $0x20] ss:$16 sps:$4 sm:$0xff] (!%p186_p2)  }
   0x8   : > { %446 = vmatprep.subr.bf16.mxu1 (!%p186_p2), %v750_v1  ;;  %746 = vset.pattern.permute.xlu0 (!%p186_p2), %v797_v2  ;;  %v759_v8 = vld [vmem:[%s923_s0 + $0x28] ss:$16 sps:$4 sm:$0xff] (!%p186_p2)   ;;  %v760_v9 = vld [vmem:[%s923_s0 + $0x44] ss:$16 sps:$4 sm:$0xff] (!%p186_p2)   ;;  %v762_v10 = vld [vmem:[%s923_s0 + $0x4c] ss:$16 sps:$4 sm:$0xff] (!%p186_p2)  }
   0x9   : > { %404 = vmatpush1.bf16.msra.mxu0 (!%p186_p2), %v752_v3  ;;  %447 = vmatpush1.bf16.msra.mxu1 (!%p186_p2), %v753_v4  ;;  %v764_v11 = vld [vmem:[%s923_s0 + $0x40] ss:$16 sps:$4 sm:$0xff] (!%p186_p2)   ;;  %v765_v12 = vld [vmem:[%s923_s0 + $0x48] ss:$16 sps:$4 sm:$0xff] (!%p186_p2)   ;;  %v766_v13 = vld [vmem:[%s923_s0 + $0x64] ss:$16 sps:$4 sm:$0xff] (!%p186_p2)  }
   0xa   : > { %405 = vmatprep.subr.bf16.mxu0 (!%p186_p2), %v754_v5  ;;  %448 = vmatprep.subr.bf16.mxu1 (!%p186_p2), %v756_v6  ;;  %v768_v14 = vld [vmem:[%s923_s0 + $0x6c] ss:$16 sps:$4 sm:$0xff] (!%p186_p2)   ;;  %v770_v15 = vld [vmem:[%s923_s0 + $0x60] ss:$16 sps:$4 sm:$0xff] (!%p186_p2)   ;;  %v771_v16 = vld [vmem:[%s923_s0 + $0x68] ss:$16 sps:$4 sm:$0xff] (!%p186_p2)  }
   0xb   : > { %v772_v17 = vld [vmem:[%s923_s0 + $0x84] ss:$16 sps:$4 sm:$0xff] (!%p186_p2)   ;;  %v774_v18 = vld [vmem:[%s923_s0 + $0x8c] ss:$16 sps:$4 sm:$0xff] (!%p186_p2)   ;;  %v776_v19 = vld [vmem:[%s923_s0 + $0x80] ss:$16 sps:$4 sm:$0xff] (!%p186_p2)  }
   0xc   : > { %v777_v20 = vld [vmem:[%s923_s0 + $0x88] ss:$16 sps:$4 sm:$0xff] (!%p186_p2)   ;;  %v778_v21 = vld [vmem:[%s923_s0 + $0xa4] ss:$16 sps:$4 sm:$0xff] (!%p186_p2)   ;;  %v780_v22 = vld [vmem:[%s923_s0 + $0xac] ss:$16 sps:$4 sm:$0xff] (!%p186_p2)  }
   0xd   : > { %406 = vmatpush1.bf16.msra.mxu0 %v758_v7  ;;  %449 = vmatpush1.bf16.msra.mxu1 %v759_v8  ;;  %s929_s21 = smov (!%p223_p3, %s690_s21), 3  ;;  %v782_v23 = vld [vmem:[%s923_s0 + $0xa0] ss:$16 sps:$4 sm:$0xff]   ;;  %v783_v24 = vld [vmem:[%s923_s0 + $0xa8] ss:$16 sps:$4 sm:$0xff]   ;;  %vm399_vm0 = vcmask 785408  }
   0xe   : > { %407 = vmatprep.subr.bf16.mxu0 %v760_v9  ;;  %450 = vmatprep.subr.bf16.mxu1 %v762_v10  ;;  %s691_s28 = sshll.u32 %s929_s21, 2  ;;  %s693_s22 = sshll.u32 %s929_s21, 3 }
   0xf   : > { %s226_s9 = scalar_lea.vmem %s924_s1, %s691_s28  ;;  %s238_s25 = scalar_lea.vmem %s926_s3, %s693_s22 }
  0x10   : > { %v784_v25 = vld [vmem:[%s226_s9] sm:$0xff]   ;;  %s232_s28 = scalar_lea.vmem %s925_s2, %s693_s22  ;;  %s732_s29 = sshll.u32 %s929_s21, 4 }
  0x11   : > { %408 = vmatpush1.bf16.msra.mxu0 %v764_v11  ;;  %451 = vmatpush1.bf16.msra.mxu1 %v765_v12  ;;  %v555_v2 = vld [vmem:[%s238_s25] sm:$0xff]  ;;  %v534_v12 = vld [vmem:[%s232_s28 + $0x8] sm:$0xff]  ;;  %s245_s6 = scalar_lea.vmem %s927_s4, %s732_s29 }
  0x12   : > { %409 = vmatprep.subr.bf16.mxu0 %v766_v13  ;;  %452 = vmatprep.subr.bf16.mxu1 %v768_v14  ;;  %v533_v9 = vld [vmem:[%s232_s28] sm:$0xff] }
  0x15   : > { %410 = vmatpush1.bf16.msra.mxu0 %v770_v15  ;;  %453 = vmatpush1.bf16.msra.mxu1 %v771_v16  ;;  %v556_v15 = vld [vmem:[%s238_s25 + $0x8] sm:$0xff] }
  0x16   : > { %411 = vmatprep.subr.bf16.mxu0 %v772_v17  ;;  %454 = vmatprep.subr.bf16.mxu1 %v774_v18 }
  0x19   : > { %412 = vmatpush1.bf16.msra.mxu0 %v776_v19  ;;  %455 = vmatpush1.bf16.msra.mxu1 %v777_v20 }
  0x1a   : > { %413 = vmatprep.subr.bf16.mxu0 %v778_v21  ;;  %456 = vmatprep.subr.bf16.mxu1 %v780_v22 }
  0x1d   : > { %414 = vmatpush1.bf16.msra.mxu0 %v782_v23  ;;  %457 = vmatpush1.bf16.msra.mxu1 %v783_v24 }
  0x20   : > { %724 = vmatmul.mubr.msk.bf16.vlgmr.msra.gmra.mrb[0].mxu0 %vm399_vm0, %v784_v25  ;;  %725 = vmatmul.mubr.msk.bf16.vlgmr.msra.gmra.mrb[0].mxu1 %vm399_vm0, %v784_v25 }
  0xf3   : > { %v437_v26 = vpop.f32.mrb[0].mxu0  ;;  %v480_v27 = vpop.f32.mrb[0].mxu1 }
  0xf4   : > { %v439_v28 = vpop.f32.mrb[1].mxu0  ;;  %v482_v29 = vpop.f32.mrb[1].mxu1 }
  0xf5   : > { %v489_v30 = vadd.f32 %v439_v28, %v437_v26  ;;  %v441_v31 = vpop.f32.mrb[2].mxu0  ;;  %v484_v32 = vpop.f32.mrb[2].mxu1 }
  0xf6   : > { %v443_v33 = vpop.f32.mrb[3].mxu0  ;;  %v486_v34 = vpop.f32.mrb[3].mxu1 }
  0xf7   : > { %v494_v35 = vadd.f32 %v443_v33, %v441_v31  ;;  %v490_v36 = vadd.f32 %v489_v30, %v480_v27 }
  0xf9   : > { %v495_v37 = vadd.f32 %v494_v35, %v484_v32  ;;  %v491_v38 = vadd.f32 %v490_v36, %v482_v29 }
  0xfb   : > { %v496_v39 = vadd.f32 %v495_v37, %v486_v34  ;;  %492 = vadd.xlane.f32.xlu0 %v491_v38 }
  0xff   : > { %497 = vadd.xlane.f32.xlu0 %v496_v39 }
 0x188   : > { %v493_v40 = vpop.xlane.xlu0 %492 }
 0x189   : > { %v499_v41 = vmul.f32 0.001953125, %v493_v40 }
 0x18b   : > { %v501_v42 = vsub.f32 %v437_v26, %v499_v41  ;;  %v502_v43 = vsub.f32 %v439_v28, %v499_v41  ;;  %v503_v44 = vsub.f32 %v480_v27, %v499_v41  ;;  %v504_v46 = vsub.f32 %v482_v29, %v499_v41 }
 0x18c   : > { %v498_v45 = vpop.xlane.xlu0 %497 }
 0x18d   : > { %v500_v47 = vmul.f32 0.001953125, %v498_v45  ;;  %v509_v48 = vmul.f32 %v501_v42, %v501_v42  ;;  %v510_v49 = vmul.f32 %v502_v43, %v502_v43  ;;  %v511_v50 = vmul.f32 %v503_v44, %v503_v44 }
 0x18e   : > { %v512_v55 = vmul.f32 %v504_v46, %v504_v46 }
 0x18f   : > { %v505_v51 = vsub.f32 %v441_v31, %v500_v47  ;;  %v506_v52 = vsub.f32 %v443_v33, %v500_v47  ;;  %v517_v53 = vadd.f32 %v510_v49, %v509_v48  ;;  %v507_v54 = vsub.f32 %v484_v32, %v500_v47 }
 0x190   : > { %v508_v57 = vsub.f32 %v486_v34, %v500_v47 }
 0x191   : > { %v518_v56 = vadd.f32 %v517_v53, %v511_v50  ;;  %v513_v58 = vmul.f32 %v505_v51, %v505_v51  ;;  %v514_v59 = vmul.f32 %v506_v52, %v506_v52  ;;  %v515_v61 = vmul.f32 %v507_v54, %v507_v54 }
 0x192   : > { %v516_v63 = vmul.f32 %v508_v57, %v508_v57 }
 0x193   : > { %v519_v60 = vadd.f32 %v518_v56, %v512_v55  ;;  %v522_v62 = vadd.f32 %v514_v59, %v513_v58 }
 0x195   : > { %520 = vadd.xlane.f32.xlu1 %v519_v60  ;;  %v523_v0 = vadd.f32 %v522_v62, %v515_v61 }
 0x197   : > { %v524_v1 = vadd.f32 %v523_v0, %v516_v63 }
 0x199   : > { %525 = vadd.xlane.f32.xlu1 %v524_v1 }
 0x1aa   : > { %559 = vperm.xlu1 %747, %v555_v2  }
 0x222   : > { %v521_v3 = vpop.xlane.xlu1 %520 }
 0x223   : > { %v527_v4 = vmul.f32 0.001953125, %v521_v3 }
 0x225   : > { %v529_v5 = vadd.f32 1e-05, %v527_v4 }
 0x226   : > { %v526_v6 = vpop.xlane.xlu1 %525 }
 0x227   : > { %785 = vrsqrt.f32 %v529_v5  ;;  %v528_v7 = vmul.f32 0.001953125, %v526_v6 }
 0x229   : > { %v530_v8 = vadd.f32 1e-05, %v528_v7 }
 0x22a   : > { %v560_v16 = vpop.permute.xlu1 %559 }
 0x22b   : > { %787 = vrsqrt.f32 %v530_v8 }
 0x231   : > { %v786_v10 = vpop.eup %785 }
 0x232   : > { %v535_v11 = vmul.f32 %v786_v10, %v533_v9 }
 0x234   : > { %539 = vperm.xlu0 %746, %v535_v11  }
 0x235   : > { %v788_v13 = vpop.eup %787 }
 0x236   : > { %v536_v14 = vmul.f32 %v788_v13, %v534_v12 }
 0x238   : > { %544 = vperm.xlu1 %747, %v536_v14  }
 0x23c   : > { %564 = vperm.xlu1 %747, %v556_v15  }
 0x2b3   : > { %v540_v17 = vpop.permute.xlu0 %539 }
 0x2b4   : > { %v547_v18 = vmul.f32 %v540_v17, %v501_v42  ;;  %v548_v19 = vmul.f32 %v540_v17, %v502_v43  ;;  %v549_v20 = vmul.f32 %v540_v17, %v503_v44  ;;  %v550_v21 = vmul.f32 %v540_v17, %v504_v46 }
 0x2b6   : > { %v567_v22 = vadd.f32 %v560_v16, %v547_v18  ;;  %v568_v23 = vadd.f32 %v560_v16, %v548_v19  ;;  %v569_v24 = vadd.f32 %v560_v16, %v549_v20  ;;  %v570_v25 = vadd.f32 %v560_v16, %v550_v21 }
 0x2b7   : > { %v545_v26 = vpop.permute.xlu1 %544 }
 0x2b8   : > { %v733_v27 = vpack.c.bf16 %v568_v23, %v567_v22  ;;  %v734_v28 = vpack.c.bf16 %v570_v25, %v569_v24  ;;  %v551_v29 = vmul.f32 %v545_v26, %v505_v51  ;;  %v552_v30 = vmul.f32 %v545_v26, %v506_v52 }
 0x2b9   : > { %v553_v31 = vmul.f32 %v545_v26, %v507_v54  ;;  %v554_v32 = vmul.f32 %v545_v26, %v508_v57 }
 0x2ba   : > { %599 = vst [vmem:[%s245_s6] sm:$0xff] %v733_v27  ;;  %600 = vst [vmem:[%s245_s6 + $0x8] sm:$0xff] %v734_v28 }
 0x2bb   : > { %v565_v33 = vpop.permute.xlu1 %564 }
 0x2bc   : > { %v571_v34 = vadd.f32 %v565_v33, %v551_v29  ;;  %v572_v35 = vadd.f32 %v565_v33, %v552_v30  ;;  %v573_v36 = vadd.f32 %v565_v33, %v553_v31  ;;  %v574_v37 = vadd.f32 %v565_v33, %v554_v32 }
 0x2be   : > { %v735_v38 = vpack.c.bf16 %v572_v35, %v571_v34  ;;  %v736_v39 = vpack.c.bf16 %v574_v37, %v573_v36 }
 0x2c0   : > { %601 = vst [vmem:[%s245_s6 + $0x10] sm:$0xff] %v735_v38  ;;  %602 = vst [vmem:[%s245_s6 + $0x18] sm:$0xff] %v736_v39 }
 0x2c1 PF: > { %s14_s15 = sadd.s32 1, %s795_s15  }
 0x2c2   : > { %p11_p4 = scmp.ge.s32.totalorder %s14_s15, 4  }
 0x2c4   :  { %13 = sbr.rel (!%p11_p4) target bundleno = 1 (0x1), region = 72 }

// kernel: _lambda_.9
= control target key start
LH: loop header
LB: loop body
LE: loop exit
PB: predicated region body
PF: predicated region fallthrough
CT: control target
= control target key end

     0   :  { %s687_s15 = smov 0   ;;  %s739_s0 = inlined_call_operand.vmem [shape: bf16[32,512], index: 0, kind: input, shape index: {}]   ;;  %s740_s1 = inlined_call_operand.vmem [shape: bf16[80,32], index: 1, kind: input, shape index: {}]   ;;  %s741_s2 = inlined_call_operand.vmem [shape: f32[80,1], index: 2, kind: input, shape index: {}]   ;;  %s742_s3 = inlined_call_operand.vmem [shape: f32[80,1], index: 3, kind: input, shape index: {}]   ;;  %s743_s4 = inlined_call_operand.vmem [shape: bf16[80,512], index: 4, kind: output, shape index: {}]  }
   0x1 LB: > { %s589_s16 = sadd.s32 4294967295, %s659_s15   ;;  %p593_p0 = scmp.ge.s32.totalorder %s659_s15, 1  ;;  %s659_s15 = sphi %s687_s15, %s14_s15  }
   0x2   : > { %p185_p1 = scmp.lt.s32.totalorder %s659_s15, 6 }
   0x4   : > { %p186_p2 = pnand %p593_p0, %p185_p1 }
   0x5   : > { %v636_v0 = vld [vmem:[%s739_s0 + $0x4] ss:$16 sps:$4 sm:$0xff] (!%p186_p2)   ;;  %s594_s19 = sshll.u32 (!%p186_p2), %s589_s16, 1  ;;  %v638_v1 = vld [vmem:[%s739_s0 + $0xc] ss:$16 sps:$4 sm:$0xff] (!%p186_p2)   ;;  %v661_v2 = vmov (!%p186_p2), 0  }
   0x6   : > { %189 = sbr.rel (%p186_p2) target bundleno = 690 (0x2b2), region = 36  ;;  %339 = vmatprep.mubr.bf16.mxu0 (!%p186_p2), %v661_v2  ;;  %382 = vmatprep.mubr.bf16.mxu1 (!%p186_p2), %v661_v2  ;;  %p223_p3 = scmp.lt.s32.totalorder (!%p186_p2), %s594_s19, 9  ;;  %v640_v3 = vld [vmem:[%s739_s0] ss:$16 sps:$4 sm:$0xff] (!%p186_p2)   ;;  %v641_v4 = vld [vmem:[%s739_s0 + $0x8] ss:$16 sps:$4 sm:$0xff] (!%p186_p2)  }
   0x7   : > { %307 = vmatprep.subr.bf16.mxu0 (!%p186_p2), %v636_v0  ;;  %635 = vset.pattern.permute.xlu1 (!%p186_p2), %v661_v2  ;;  %v642_v5 = vld [vmem:[%s739_s0 + $0x24] ss:$16 sps:$4 sm:$0xff] (!%p186_p2)   ;;  %v644_v6 = vld [vmem:[%s739_s0 + $0x2c] ss:$16 sps:$4 sm:$0xff] (!%p186_p2)   ;;  %v646_v7 = vld [vmem:[%s739_s0 + $0x20] ss:$16 sps:$4 sm:$0xff] (!%p186_p2)  }
   0x8   : > { %350 = vmatprep.subr.bf16.mxu1 (!%p186_p2), %v638_v1  ;;  %634 = vset.pattern.permute.xlu0 (!%p186_p2), %v661_v2  ;;  %v647_v8 = vld [vmem:[%s739_s0 + $0x28] ss:$16 sps:$4 sm:$0xff] (!%p186_p2)   ;;  %vm303_vm0 = vcmask (!%p186_p2), 261120  }
   0x9   : > { %308 = vmatpush1.bf16.msra.mxu0 (!%p186_p2), %v640_v3  ;;  %351 = vmatpush1.bf16.msra.mxu1 (!%p186_p2), %v641_v4 }
   0xa   : > { %309 = vmatprep.subr.bf16.mxu0 (!%p186_p2), %v642_v5  ;;  %352 = vmatprep.subr.bf16.mxu1 (!%p186_p2), %v644_v6 }
   0xd   : > { %s745_s19 = smov (!%p223_p3, %s594_s19), 9  ;;  %310 = vmatpush1.bf16.msra.mxu0 %v646_v7  ;;  %353 = vmatpush1.bf16.msra.mxu1 %v647_v8 }
   0xe   : > { %s595_s8 = sshll.u32 %s745_s19, 2  ;;  %s597_s12 = sshll.u32 %s745_s19, 3 }
   0xf   : > { %s226_s11 = scalar_lea.vmem %s740_s1, %s595_s8  ;;  %s238_s16 = scalar_lea.vmem %s742_s3, %s597_s12 }
  0x10   : > { %v648_v9 = vld [vmem:[%s226_s11] sm:$0xff]   ;;  %s232_s20 = scalar_lea.vmem %s741_s2, %s597_s12  ;;  %v460_v63 = vld [vmem:[%s238_s16 + $0x8] sm:$0xff]  ;;  %s620_s21 = sshll.u32 %s745_s19, 4 }
  0x11   : > { %612 = vmatmul.mubr.msk.bf16.vlgmr.msra.gmra.mrb[0].mxu0 %vm303_vm0, %v648_v9  ;;  %613 = vmatmul.mubr.msk.bf16.vlgmr.msra.gmra.mrb[0].mxu1 %vm303_vm0, %v648_v9  ;;  %v459_v50 = vld [vmem:[%s238_s16] sm:$0xff]  ;;  %v438_v60 = vld [vmem:[%s232_s20 + $0x8] sm:$0xff]  ;;  %s245_s24 = scalar_lea.vmem %s743_s4, %s620_s21 }
  0x12   : > { %v437_v57 = vld [vmem:[%s232_s20] sm:$0xff] }
  0xe4   : > { %v341_v10 = vpop.f32.mrb[0].mxu0  ;;  %v384_v11 = vpop.f32.mrb[0].mxu1 }
  0xe5   : > { %v343_v12 = vpop.f32.mrb[1].mxu0  ;;  %v386_v13 = vpop.f32.mrb[1].mxu1 }
  0xe6   : > { %v393_v14 = vadd.f32 %v343_v12, %v341_v10  ;;  %v345_v15 = vpop.f32.mrb[2].mxu0  ;;  %v388_v16 = vpop.f32.mrb[2].mxu1 }
  0xe7   : > { %v347_v17 = vpop.f32.mrb[3].mxu0  ;;  %v390_v18 = vpop.f32.mrb[3].mxu1 }
  0xe8   : > { %v398_v19 = vadd.f32 %v347_v17, %v345_v15  ;;  %v394_v20 = vadd.f32 %v393_v14, %v384_v11 }
  0xea   : > { %v399_v21 = vadd.f32 %v398_v19, %v388_v16  ;;  %v395_v22 = vadd.f32 %v394_v20, %v386_v13 }
  0xec   : > { %v400_v23 = vadd.f32 %v399_v21, %v390_v18  ;;  %396 = vadd.xlane.f32.xlu0 %v395_v22 }
  0xf0   : > { %401 = vadd.xlane.f32.xlu0 %v400_v23 }
 0x179   : > { %v397_v24 = vpop.xlane.xlu0 %396 }
 0x17a   : > { %v403_v25 = vmul.f32 0.001953125, %v397_v24 }
 0x17c   : > { %v405_v26 = vsub.f32 %v341_v10, %v403_v25  ;;  %v406_v27 = vsub.f32 %v343_v12, %v403_v25  ;;  %v407_v28 = vsub.f32 %v384_v11, %v403_v25  ;;  %v408_v30 = vsub.f32 %v386_v13, %v403_v25 }
 0x17d   : > { %v402_v29 = vpop.xlane.xlu0 %401 }
 0x17e   : > { %v404_v31 = vmul.f32 0.001953125, %v402_v29  ;;  %v413_v32 = vmul.f32 %v405_v26, %v405_v26  ;;  %v414_v33 = vmul.f32 %v406_v27, %v406_v27  ;;  %v415_v34 = vmul.f32 %v407_v28, %v407_v28 }
 0x17f   : > { %v416_v39 = vmul.f32 %v408_v30, %v408_v30 }
 0x180   : > { %v409_v35 = vsub.f32 %v345_v15, %v404_v31  ;;  %v410_v36 = vsub.f32 %v347_v17, %v404_v31  ;;  %v421_v37 = vadd.f32 %v414_v33, %v413_v32  ;;  %v411_v38 = vsub.f32 %v388_v16, %v404_v31 }
 0x181   : > { %v412_v41 = vsub.f32 %v390_v18, %v404_v31 }
 0x182   : > { %v422_v40 = vadd.f32 %v421_v37, %v415_v34  ;;  %v417_v42 = vmul.f32 %v409_v35, %v409_v35  ;;  %v418_v43 = vmul.f32 %v410_v36, %v410_v36  ;;  %v419_v45 = vmul.f32 %v411_v38, %v411_v38 }
 0x183   : > { %v420_v47 = vmul.f32 %v412_v41, %v412_v41 }
 0x184   : > { %v423_v44 = vadd.f32 %v422_v40, %v416_v39  ;;  %v426_v46 = vadd.f32 %v418_v43, %v417_v42 }
 0x186   : > { %424 = vadd.xlane.f32.xlu1 %v423_v44  ;;  %v427_v48 = vadd.f32 %v426_v46, %v419_v45 }
 0x188   : > { %v428_v49 = vadd.f32 %v427_v48, %v420_v47 }
 0x18a   : > { %429 = vadd.xlane.f32.xlu1 %v428_v49 }
 0x19b   : > { %463 = vperm.xlu1 %635, %v459_v50  }
 0x213   : > { %v425_v51 = vpop.xlane.xlu1 %424 }
 0x214   : > { %v431_v52 = vmul.f32 0.001953125, %v425_v51 }
 0x216   : > { %v433_v53 = vadd.f32 1e-05, %v431_v52 }
 0x217   : > { %v430_v54 = vpop.xlane.xlu1 %429 }
 0x218   : > { %649 = vrsqrt.f32 %v433_v53  ;;  %v432_v55 = vmul.f32 0.001953125, %v430_v54 }
 0x21a   : > { %v434_v56 = vadd.f32 1e-05, %v432_v55 }
 0x21b   : > { %v464_v0 = vpop.permute.xlu1 %463 }
 0x21c   : > { %651 = vrsqrt.f32 %v434_v56 }
 0x222   : > { %v650_v58 = vpop.eup %649 }
 0x223   : > { %v439_v59 = vmul.f32 %v650_v58, %v437_v57 }
 0x225   : > { %443 = vperm.xlu0 %634, %v439_v59  }
 0x226   : > { %v652_v61 = vpop.eup %651 }
 0x227   : > { %v440_v62 = vmul.f32 %v652_v61, %v438_v60 }
 0x229   : > { %448 = vperm.xlu1 %635, %v440_v62  }
 0x22d   : > { %468 = vperm.xlu1 %635, %v460_v63  }
 0x2a4   : > { %v444_v1 = vpop.permute.xlu0 %443 }
 0x2a5   : > { %v451_v2 = vmul.f32 %v444_v1, %v405_v26  ;;  %v452_v3 = vmul.f32 %v444_v1, %v406_v27  ;;  %v453_v4 = vmul.f32 %v444_v1, %v407_v28  ;;  %v454_v5 = vmul.f32 %v444_v1, %v408_v30 }
 0x2a7   : > { %v471_v6 = vadd.f32 %v464_v0, %v451_v2  ;;  %v472_v7 = vadd.f32 %v464_v0, %v452_v3  ;;  %v473_v8 = vadd.f32 %v464_v0, %v453_v4  ;;  %v474_v9 = vadd.f32 %v464_v0, %v454_v5 }
 0x2a8   : > { %v449_v10 = vpop.permute.xlu1 %448 }
 0x2a9   : > { %v621_v11 = vpack.c.bf16 %v472_v7, %v471_v6  ;;  %v622_v12 = vpack.c.bf16 %v474_v9, %v473_v8  ;;  %v455_v13 = vmul.f32 %v449_v10, %v409_v35  ;;  %v456_v14 = vmul.f32 %v449_v10, %v410_v36 }
 0x2aa   : > { %v457_v15 = vmul.f32 %v449_v10, %v411_v38  ;;  %v458_v16 = vmul.f32 %v449_v10, %v412_v41 }
 0x2ab   : > { %503 = vst [vmem:[%s245_s24] sm:$0xff] %v621_v11  ;;  %504 = vst [vmem:[%s245_s24 + $0x8] sm:$0xff] %v622_v12 }
 0x2ac   : > { %v469_v17 = vpop.permute.xlu1 %468 }
 0x2ad   : > { %v475_v18 = vadd.f32 %v469_v17, %v455_v13  ;;  %v476_v19 = vadd.f32 %v469_v17, %v456_v14  ;;  %v477_v20 = vadd.f32 %v469_v17, %v457_v15  ;;  %v478_v21 = vadd.f32 %v469_v17, %v458_v16 }
 0x2af   : > { %v623_v22 = vpack.c.bf16 %v476_v19, %v475_v18  ;;  %v624_v23 = vpack.c.bf16 %v478_v21, %v477_v20 }
 0x2b1   : > { %505 = vst [vmem:[%s245_s24 + $0x10] sm:$0xff] %v623_v22  ;;  %506 = vst [vmem:[%s245_s24 + $0x18] sm:$0xff] %v624_v23 }
 0x2b2 PF: > { %s14_s15 = sadd.s32 1, %s659_s15  }
 0x2b3   : > { %p11_p4 = scmp.ge.s32.totalorder %s14_s15, 7  }
 0x2b5   :  { %13 = sbr.rel (!%p11_p4) target bundleno = 1 (0x1), region = 72 }

// kernel: _lambda_.10
= control target key start
LH: loop header
LB: loop body
LE: loop exit
PB: predicated region body
PF: predicated region fallthrough
CT: control target
= control target key end

     0   :  { %s1170_s24 = smov 0   ;;  %s1241_s0 = inlined_call_operand.vmem [shape: bf16[2,16,64], index: 0, kind: input, shape index: {}]   ;;  %s1242_s1 = inlined_call_operand.vmem [shape: bf16[2,16,64], index: 1, kind: input, shape index: {}]   ;;  %s1243_s2 = inlined_call_operand.vmem [shape: bf16[2,16,512], index: 2, kind: input, shape index: {}]   ;;  %s1244_s3 = inlined_call_operand.vmem [shape: bf16[2,16,64], index: 3, kind: input, shape index: {}]   ;;  %s1245_s4 = inlined_call_operand.vmem [shape: bf16[2,16,64], index: 4, kind: input, shape index: {}]   ;;  %s1246_s5 = inlined_call_operand.vmem [shape: bf16[2,16,512], index: 5, kind: input, shape index: {}]   ;;  %s1247_s6 = inlined_call_operand.vmem [shape: bf16[2,16,512], index: 6, kind: input, shape index: {}]   ;;  %s1248_s7 = inlined_call_operand.vmem [shape: bf16[2,16,512], index: 7, kind: output, shape index: {}]  }
   0x1 LB: > { %s1003_s25 = sadd.s32 4294967295, %s1125_s24   ;;  %p1007_p0 = scmp.ge.s32.totalorder %s1125_s24, 1  ;;  %s1125_s24 = sphi %s1170_s24, %s17_s24  }
   0x2   : > { %p297_p1 = scmp.lt.s32.totalorder %s1125_s24, 3 }
   0x4   : > { %p298_p2 = pnand %p1007_p0, %p297_p1 }
   0x5   : > { %p359_p3 = scmp.lt.s32.totalorder (!%p298_p2), %s1003_s25, 1  ;;  %v1127_v0 = vmov (!%p298_p2), 0.0   ;;  %vm1128_vm0 = vmmov (!%p298_p2), 0   ;;  %vm418_vm1 = vcmask (!%p298_p2), 523264   ;;  %vm466_vm2 = vcmask (!%p298_p2), 130048  }
   0x6   : > { %301 = sbr.rel (%p298_p2) target bundleno = 797 (0x31d), region = 48  ;;  %1064 = vmatprep.subr.bf16.mxu0 (!%p298_p2), %v1127_v0  ;;  %1066 = vmatprep.mubr.msk.bf16.mxu0 (!%p298_p2), %vm1128_vm0, %v1127_v0  ;;  %v1129_v41 = vmov (!%p298_p2), 0  }
   0x7   : > { %545 = vmatprep.mubr.bf16.mxu1 (!%p298_p2), %v1129_v41 }
   0xd   : > { %s1250_s25 = smov (!%p359_p3, %s1003_s25), 1 }
   0xe   : > { %s1048_s26 = sshll.u32 %s1250_s25, 3  ;;  %s1204_s16 = sshll.u32 %s1250_s25, 5 }
   0xf   : > { %s368_s29 = scalar_lea.vmem %s1242_s1, %s1048_s26  ;;  %s363_s9 = scalar_lea.vmem %s1241_s0, %s1048_s26 }
  0x10   : > { %v1087_v1 = vld [vmem:[%s368_s29] sm:$0xff]   ;;  %s383_s12 = scalar_lea.vmem %s1245_s4, %s1048_s26  ;;  %s378_s15 = scalar_lea.vmem %s1244_s3, %s1048_s26 }
  0x11   : > { %v423_v2 = vsel %vm418_vm1, %v1087_v1, 0  ;;  %v1089_v3 = vld [vmem:[%s383_s12] sm:$0xff]   ;;  %s373_s19 = scalar_lea.vmem %s1243_s2, %s1204_s16  ;;  %s388_s22 = scalar_lea.vmem %s1246_s5, %s1204_s16 }
  0x12   : > { %1065 = vmatpush3.bf16.xpose.msra.mxu0 %v423_v2  ;;  %v1088_v4 = vld [vmem:[%s363_s9] sm:$0xff]   ;;  %v621_v5 = vsel %vm418_vm1, %v1089_v3, 0  ;;  %v1096_v42 = vld [vmem:[%s373_s19 + $0xc] ss:$16 sps:$4 sm:$0xff]   ;;  %v1097_v43 = vld [vmem:[%s388_s22 + $0x8] ss:$16 sps:$4 sm:$0xff]   ;;  %s1222_s26 = scalar_lea.vmem %s1247_s6, %s1204_s16  ;;  %s1232_s29 = scalar_lea.vmem %s1248_s7, %s1204_s16 }
  0x13   : > { %1070 = vmatprep.subr.bf16.mxu0 %v1127_v0  ;;  %v1090_v6 = vld [vmem:[%s378_s15] sm:$0xff]   ;;  %v1099_v44 = vld [vmem:[%s388_s22 + $0xc] ss:$16 sps:$4 sm:$0xff]   ;;  %v1094_v53 = vld [vmem:[%s373_s19 + $0x8] ss:$16 sps:$4 sm:$0xff]  }
  0x14   : > { %v1091_v39 = vld [vmem:[%s373_s19 + $0x4] ss:$16 sps:$4 sm:$0xff]   ;;  %v1093_v40 = vld [vmem:[%s373_s19] ss:$16 sps:$4 sm:$0xff]   ;;  %v799_v1 = vld [vmem:[%s1222_s26 + $0x18] sm:$0xff] }
  0x15   : > { %513 = vmatprep.subr.bf16.mxu1 %v1091_v39  ;;  %v1102_v55 = vld [vmem:[%s388_s22 + $0x4] ss:$16 sps:$4 sm:$0xff]   ;;  %v1100_v60 = vld [vmem:[%s388_s22] ss:$16 sps:$4 sm:$0xff]  }
  0x16   : > { %514 = vmatpush1.bf16.msra.mxu1 %v1093_v40 }
  0x17   : > { %556 = vmatprep.subr.bf16.mxu1 %v1096_v42 }
  0x19   : > { %1067 = vmatmul.mubr.msk.bf16.vlgmr.msra.gmra.mrb[0].mxu0 %vm418_vm1, %v1088_v4 }
  0x1a   : > { %1071 = vmatpush3.bf16.xpose.msra.mxu0 %v621_v5  ;;  %1072 = vmatprep.mubr.msk.bf16.mxu0 %vm1128_vm0, %v1127_v0  ;;  %v797_v0 = vld [vmem:[%s1222_s26 + $0x8] sm:$0xff] }
  0x1b   : > { %753 = vmatprep.subr.bf16.mxu0 %v1099_v44  ;;  %v802_v4 = vunpack.c.l.bf16 %v797_v0  ;;  %v803_v5 = vunpack.c.h.bf16 %v797_v0 }
  0x21   : > { %1073 = vmatmul.mubr.msk.bf16.vlgmr.msra.gmra.mrb[4].mxu0 %vm418_vm1, %v1090_v6  ;;  %v806_v6 = vunpack.c.l.bf16 %v799_v1 }
  0x22   : > { %785 = vmatprep.mubr.bf16.mxu0 %v1129_v41  ;;  %754 = vmatpush1.bf16.msra.mxu0 %v1097_v43 }
  0xec   : > { %v459_v7 = vpop.f32.mrb[0].mxu0 }
  0xed   : > { %v1068_v8 = vpop.f32.mrb[1].mxu0  ;;  %v467_v9 = vsel %vm466_vm2, %v459_v7, -inf }
  0xee   : > { %468 = vmax.xlane.f32.xlu0 %v467_v9  ;;  %v462_v10 = vpop.f32.mrb[2].mxu0  ;;  %v834_v9 = vmul.f32 2.0, %v802_v4 }
  0xef   : > { %v1069_v11 = vpop.f32.mrb[3].mxu0  ;;  %v470_v12 = vsel %vm466_vm2, %v462_v10, -inf }
  0xf0   : > { %v838_v11 = vmul.f32 2.0, %v806_v6 }
  0xf2   : > { %471 = vmax.xlane.f32.xlu0 %v470_v12  ;;  %v807_v12 = vunpack.c.h.bf16 %v799_v1 }
  0xf4   : > { %v657_v13 = vpop.f32.mrb[4].mxu0 }
  0xf5   : > { %v664_v14 = vsel %vm466_vm2, %v657_v13, -inf  ;;  %v1074_v15 = vpop.f32.mrb[5].mxu0 }
  0xf6   : > { %665 = vmax.xlane.f32.xlu1 %v664_v14  ;;  %v660_v16 = vpop.f32.mrb[6].mxu0 }
  0xf7   : > { %v667_v17 = vsel %vm466_vm2, %v660_v16, -inf  ;;  %v1075_v18 = vpop.f32.mrb[7].mxu0 }
  0xfa   : > { %668 = vmax.xlane.f32.xlu1 %v667_v17 }
 0x17b   : > { %v469_v19 = vpop.xlane.xlu0 %468 }
 0x17c   : > { %v473_v20 = vsub.f32 %v459_v7, %v469_v19 }
 0x17e   : > { %v475_v21 = vmul.f32 1.442695, %v473_v20 }
 0x17f   : > { %v472_v22 = vpop.xlane.xlu0 %471 }
 0x180   : > { %1103 = vpow2.f32 %v475_v21  ;;  %v474_v23 = vsub.f32 %v462_v10, %v472_v22  ;;  %v835_v10 = vmul.f32 2.0, %v803_v5 }
 0x182   : > { %v477_v24 = vmul.f32 1.442695, %v474_v23 }
 0x183   : > { %v666_v25 = vpop.xlane.xlu1 %665 }
 0x184   : > { %1105 = vpow2.f32 %v477_v24  ;;  %v670_v26 = vsub.f32 %v657_v13, %v666_v25  ;;  %v796_v13 = vld [vmem:[%s1222_s26] sm:$0xff] }
 0x186   : > { %v672_v27 = vmul.f32 1.442695, %v670_v26 }
 0x187   : > { %v669_v28 = vpop.xlane.xlu1 %668 }
 0x188   : > { %1107 = vpow2.f32 %v672_v27  ;;  %v671_v29 = vsub.f32 %v660_v16, %v669_v28 }
 0x18a   : > { %v1104_v30 = vpop.eup %1103  ;;  %v674_v31 = vmul.f32 1.442695, %v671_v29 }
 0x18b   : > { %v479_v32 = vsel %vm466_vm2, %v1104_v30, 0.0 }
 0x18c   : > { %1109 = vpow2.f32 %v674_v31  ;;  %480 = vadd.xlane.f32.xlu0 %v479_v32  ;;  %v798_v31 = vld [vmem:[%s1222_s26 + $0x10] sm:$0xff] }
 0x18d   : > { %v804_v39 = vunpack.c.l.bf16 %v798_v31  ;;  %v805_v43 = vunpack.c.h.bf16 %v798_v31 }
 0x18e   : > { %v1106_v33 = vpop.eup %1105 }
 0x18f   : > { %v482_v34 = vsel %vm466_vm2, %v1106_v33, 0.0 }
 0x190   : > { %483 = vadd.xlane.f32.xlu1 %v482_v34  ;;  %v800_v34 = vunpack.c.l.bf16 %v796_v13 }
 0x192   : > { %v1108_v35 = vpop.eup %1107 }
 0x193   : > { %v676_v36 = vsel %vm466_vm2, %v1108_v35, 0.0 }
 0x194   : > { %677 = vadd.xlane.f32.xlu0 %v676_v36 }
 0x196   : > { %v1110_v37 = vpop.eup %1109 }
 0x197   : > { %v679_v38 = vsel %vm466_vm2, %v1110_v37, 0.0 }
 0x198   : > { %680 = vadd.xlane.f32.xlu1 %v679_v38 }
 0x219   : > { %v481_v45 = vpop.xlane.xlu0 %480 }
 0x21a   : > { %1111 = vrcp.f32 %v481_v45 }
 0x21d   : > { %v484_v46 = vpop.xlane.xlu1 %483 }
 0x21e   : > { %1113 = vrcp.f32 %v484_v46  ;;  %v832_v46 = vmul.f32 2.0, %v800_v34 }
 0x221   : > { %v678_v47 = vpop.xlane.xlu0 %677 }
 0x222   : > { %1115 = vrcp.f32 %v678_v47 }
 0x224   : > { %v1112_v49 = vpop.eup %1111 }
 0x225   : > { %v681_v48 = vpop.xlane.xlu1 %680  ;;  %v487_v51 = vmul.f32 %v1112_v49, %v1104_v30  ;;  %v839_v30 = vmul.f32 2.0, %v807_v12 }
 0x226   : > { %1117 = vrcp.f32 %v681_v48 }
 0x228   : > { %v1114_v50 = vpop.eup %1113 }
 0x229   : > { %v488_v52 = vmul.f32 %v1114_v50, %v1106_v33 }
 0x22b   : > { %v489_v54 = vpack.c.bf16 %v488_v52, %v487_v51 }
 0x22c   : > { %v1116_v56 = vpop.eup %1115 }
 0x22d   : > { %1031 = vmatmul.mubr.msk.bf16.vlgmr.msra.gmra.mrb[0].mxu1 %vm466_vm2, %v489_v54  ;;  %v684_v58 = vmul.f32 %v1116_v56, %v1108_v35  ;;  %v836_v56 = vmul.f32 2.0, %v804_v39 }
 0x22e   : > { %557 = vmatpush1.bf16.msra.mxu1 %v1094_v53  ;;  %588 = vmatprep.mubr.bf16.mxu1 %v1129_v41 }
 0x22f   : > { %710 = vmatprep.subr.bf16.mxu1 %v1102_v55 }
 0x230   : > { %v1118_v57 = vpop.eup %1117 }
 0x231   : > { %v685_v59 = vmul.f32 %v1118_v57, %v1110_v37  ;;  %v801_v37 = vunpack.c.h.bf16 %v796_v13 }
 0x233   : > { %v686_v61 = vpack.c.bf16 %v685_v59, %v684_v58  ;;  %v833_v51 = vmul.f32 2.0, %v801_v37 }
 0x235   : > { %1032 = vmatmul.mubr.msk.bf16.vlgmr.msra.gmra.mrb[4].mxu1 %vm466_vm2, %v489_v54  ;;  %1041 = vmatmul.mubr.msk.bf16.vlgmr.msra.gmra.mrb[8].mxu0 %vm466_vm2, %v686_v61 }
 0x236   : > { %711 = vmatpush1.bf16.msra.mxu1 %v1100_v60  ;;  %742 = vmatprep.mubr.bf16.mxu1 %v1129_v41 }
 0x23d   : > { %1040 = vmatmul.mubr.msk.bf16.vlgmr.msra.gmra.mrb[8].mxu1 %vm466_vm2, %v686_v61  ;;  %v837_v61 = vmul.f32 2.0, %v805_v43 }
 0x300   : > { %v547_v62 = vpop.f32.mrb[0].mxu1 }
 0x301   : > { %v549_v63 = vpop.f32.mrb[1].mxu1  ;;  %v808_v44 = vmul.f32 0.1, %v547_v62 }
 0x302   : > { %v551_v2 = vpop.f32.mrb[2].mxu1  ;;  %v809_v48 = vmul.f32 0.1, %v549_v63 }
 0x303   : > { %v553_v3 = vpop.f32.mrb[3].mxu1  ;;  %v812_v53 = vmul.f32 0.1, %v551_v2 }
 0x304   : > { %v813_v58 = vmul.f32 0.1, %v553_v3 }
 0x308   : > { %v590_v7 = vpop.f32.mrb[4].mxu1  ;;  %v787_v8 = vpop.f32.mrb[8].mxu0 }
 0x309   : > { %v810_v14 = vmul.f32 0.1, %v590_v7  ;;  %v818_v15 = vmul.f32 0.1, %v787_v8  ;;  %v592_v16 = vpop.f32.mrb[5].mxu1  ;;  %v789_v17 = vpop.f32.mrb[9].mxu0 }
 0x30a   : > { %v811_v18 = vmul.f32 0.1, %v592_v16  ;;  %v819_v19 = vmul.f32 0.1, %v789_v17  ;;  %v594_v20 = vpop.f32.mrb[6].mxu1  ;;  %v791_v21 = vpop.f32.mrb[10].mxu0 }
 0x30b   : > { %v826_v22 = vadd.f32 %v818_v15, %v810_v14  ;;  %v814_v23 = vmul.f32 0.1, %v594_v20  ;;  %v822_v24 = vmul.f32 0.1, %v791_v21  ;;  %v596_v25 = vpop.f32.mrb[7].mxu1  ;;  %v793_v26 = vpop.f32.mrb[11].mxu0 }
 0x30c   : > { %v827_v27 = vadd.f32 %v819_v19, %v811_v18  ;;  %v815_v28 = vmul.f32 0.1, %v596_v25  ;;  %v823_v29 = vmul.f32 0.1, %v793_v26 }
 0x30d   : > { %v842_v32 = vadd.f32 %v834_v9, %v826_v22  ;;  %v830_v33 = vadd.f32 %v822_v24, %v814_v23 }
 0x30e   : > { %v843_v35 = vadd.f32 %v835_v10, %v827_v27  ;;  %v831_v36 = vadd.f32 %v823_v29, %v815_v28 }
 0x30f   : > { %v846_v38 = vadd.f32 %v838_v11, %v830_v33 }
 0x310   : > { %v1057_v40 = vpack.c.bf16 %v843_v35, %v842_v32  ;;  %v847_v41 = vadd.f32 %v839_v30, %v831_v36  ;;  %v744_v42 = vpop.f32.mrb[8].mxu1 }
 0x311   : > { %v816_v45 = vmul.f32 0.1, %v744_v42  ;;  %v746_v47 = vpop.f32.mrb[9].mxu1 }
 0x312   : > { %873 = vst [vmem:[%s1232_s29 + $0x8] sm:$0xff] %v1057_v40  ;;  %v1059_v49 = vpack.c.bf16 %v847_v41, %v846_v38  ;;  %v817_v50 = vmul.f32 0.1, %v746_v47  ;;  %v748_v52 = vpop.f32.mrb[10].mxu1 }
 0x313   : > { %v824_v54 = vadd.f32 %v816_v45, %v808_v44  ;;  %v820_v55 = vmul.f32 0.1, %v748_v52  ;;  %v750_v57 = vpop.f32.mrb[11].mxu1 }
 0x314   : > { %875 = vst [vmem:[%s1232_s29 + $0x18] sm:$0xff] %v1059_v49  ;;  %v825_v59 = vadd.f32 %v817_v50, %v809_v48  ;;  %v821_v60 = vmul.f32 0.1, %v750_v57 }
 0x315   : > { %v840_v62 = vadd.f32 %v832_v46, %v824_v54  ;;  %v828_v0 = vadd.f32 %v820_v55, %v812_v53 }
 0x316   : > { %v841_v63 = vadd.f32 %v833_v51, %v825_v59  ;;  %v829_v1 = vadd.f32 %v821_v60, %v813_v58 }
 0x317   : > { %v844_v4 = vadd.f32 %v836_v56, %v828_v0 }
 0x318   : > { %v1056_v5 = vpack.c.bf16 %v841_v63, %v840_v62  ;;  %v845_v6 = vadd.f32 %v837_v61, %v829_v1 }
 0x31a   : > { %872 = vst [vmem:[%s1232_s29] sm:$0xff] %v1056_v5  ;;  %v1058_v2 = vpack.c.bf16 %v845_v6, %v844_v4 }
 0x31c   : > { %874 = vst [vmem:[%s1232_s29 + $0x10] sm:$0xff] %v1058_v2 }
 0x31d PF: > { %s17_s24 = sadd.s32 1, %s1125_s24  }
 0x31e   : > { %p14_p4 = scmp.ge.s32.totalorder %s17_s24, 4  }
 0x320   :  { %16 = sbr.rel (!%p14_p4) target bundleno = 1 (0x1), region = 96 }

// kernel: _lambda_.11
= control target key start
LH: loop header
LB: loop body
LE: loop exit
PB: predicated region body
PF: predicated region fallthrough
CT: control target
= control target key end

     0   :  { %s1318_s15 = smov 0   ;;  %s1573_s0 = inlined_call_operand.vmem [shape: bf16[288,512], index: 0, kind: input, shape index: {}]   ;;  %s1574_s1 = inlined_call_operand.vmem [shape: bf16[32,288], index: 1, kind: input, shape index: {}]   ;;  %s1575_s2 = inlined_call_operand.vmem [shape: f32[32,1], index: 2, kind: input, shape index: {}]   ;;  %s1576_s3 = inlined_call_operand.vmem [shape: f32[32,1], index: 3, kind: input, shape index: {}]   ;;  %s1577_s4 = inlined_call_operand.vmem [shape: f32[32,512], index: 4, kind: output, shape index: {}]  }
   0x1 LB: > { %s1054_s16 = sadd.s32 4294967295, %s1290_s15   ;;  %p1058_p0 = scmp.ge.s32.totalorder %s1290_s15, 1  ;;  %s1290_s15 = sphi %s1318_s15, %s14_s15  }
   0x2   : > { %p186_p1 = scmp.lt.s32.totalorder %s1290_s15, 3 }
   0x4   : > { %p187_p2 = pnand %p1058_p0, %p186_p1 }
   0x5   : > { %v1168_v0 = vld [vmem:[%s1573_s0 + $0x4] ss:$16 sps:$4 sm:$0xff] (!%p187_p2)   ;;  %v1170_v1 = vld [vmem:[%s1573_s0 + $0xc] ss:$16 sps:$4 sm:$0xff] (!%p187_p2)   ;;  %v1292_v2 = vmov (!%p187_p2), 0   ;;  %s1059_s29 = sshll.u32 (!%p187_p2), %s1054_s16, 1 }
   0x6   : > { %190 = sbr.rel (%p187_p2) target bundleno = 755 (0x2f3), region = 36  ;;  %1167 = vset.pattern.permute.xlu1 (!%p187_p2), %v1292_v2  ;;  %1166 = vset.pattern.permute.xlu0 (!%p187_p2), %v1292_v2  ;;  %v1172_v3 = vld [vmem:[%s1573_s0] ss:$16 sps:$4 sm:$0xff] (!%p187_p2)   ;;  %v1173_v4 = vld [vmem:[%s1573_s0 + $0x8] ss:$16 sps:$4 sm:$0xff] (!%p187_p2)   ;;  %p225_p3 = scmp.lt.s32.totalorder (!%p187_p2), %s1059_s29, 3 }
   0x7   : > { %706 = vmatprep.subr.bf16.mxu0 (!%p187_p2), %v1168_v0  ;;  %792 = vmatprep.subr.bf16.mxu1 (!%p187_p2), %v1170_v1  ;;  %v1174_v5 = vld [vmem:[%s1573_s0 + $0x24] ss:$16 sps:$4 sm:$0xff] (!%p187_p2)   ;;  %v1176_v6 = vld [vmem:[%s1573_s0 + $0x2c] ss:$16 sps:$4 sm:$0xff] (!%p187_p2)   ;;  %v1178_v7 = vld [vmem:[%s1573_s0 + $0x20] ss:$16 sps:$4 sm:$0xff] (!%p187_p2)  }
   0x8   : > { %707 = vmatpush1.bf16.msra.mxu0 (!%p187_p2), %v1172_v3  ;;  %793 = vmatpush1.bf16.msra.mxu1 (!%p187_p2), %v1173_v4  ;;  %v1179_v8 = vld [vmem:[%s1573_s0 + $0x28] ss:$16 sps:$4 sm:$0xff] (!%p187_p2)   ;;  %v1180_v9 = vld [vmem:[%s1573_s0 + $0x44] ss:$16 sps:$4 sm:$0xff] (!%p187_p2)   ;;  %v1182_v10 = vld [vmem:[%s1573_s0 + $0x4c] ss:$16 sps:$4 sm:$0xff] (!%p187_p2)  }
   0x9   : > { %708 = vmatprep.subr.bf16.mxu0 (!%p187_p2), %v1174_v5  ;;  %794 = vmatprep.subr.bf16.mxu1 (!%p187_p2), %v1176_v6  ;;  %v1184_v11 = vld [vmem:[%s1573_s0 + $0x40] ss:$16 sps:$4 sm:$0xff] (!%p187_p2)   ;;  %v1185_v12 = vld [vmem:[%s1573_s0 + $0x48] ss:$16 sps:$4 sm:$0xff] (!%p187_p2)   ;;  %v1186_v13 = vld [vmem:[%s1573_s0 + $0x64] ss:$16 sps:$4 sm:$0xff] (!%p187_p2)  }
   0xa   : > { %v1188_v14 = vld [vmem:[%s1573_s0 + $0x6c] ss:$16 sps:$4 sm:$0xff] (!%p187_p2)   ;;  %v1190_v15 = vld [vmem:[%s1573_s0 + $0x60] ss:$16 sps:$4 sm:$0xff] (!%p187_p2)   ;;  %v1191_v16 = vld [vmem:[%s1573_s0 + $0x68] ss:$16 sps:$4 sm:$0xff] (!%p187_p2)  }
   0xb   : > { %v1192_v17 = vld [vmem:[%s1573_s0 + $0x84] ss:$16 sps:$4 sm:$0xff] (!%p187_p2)   ;;  %v1194_v18 = vld [vmem:[%s1573_s0 + $0x8c] ss:$16 sps:$4 sm:$0xff] (!%p187_p2)   ;;  %v1196_v19 = vld [vmem:[%s1573_s0 + $0x80] ss:$16 sps:$4 sm:$0xff] (!%p187_p2)  }
   0xc   : > { %709 = vmatpush1.bf16.msra.mxu0 (!%p187_p2), %v1178_v7  ;;  %795 = vmatpush1.bf16.msra.mxu1 (!%p187_p2), %v1179_v8  ;;  %v1197_v20 = vld [vmem:[%s1573_s0 + $0x88] ss:$16 sps:$4 sm:$0xff] (!%p187_p2)   ;;  %v1198_v21 = vld [vmem:[%s1573_s0 + $0xa4] ss:$16 sps:$4 sm:$0xff] (!%p187_p2)   ;;  %v1200_v22 = vld [vmem:[%s1573_s0 + $0xac] ss:$16 sps:$4 sm:$0xff] (!%p187_p2)  }
   0xd   : > { %710 = vmatprep.subr.bf16.mxu0 %v1180_v9  ;;  %796 = vmatprep.subr.bf16.mxu1 %v1182_v10  ;;  %v1202_v23 = vld [vmem:[%s1573_s0 + $0xa0] ss:$16 sps:$4 sm:$0xff]   ;;  %v1203_v24 = vld [vmem:[%s1573_s0 + $0xa8] ss:$16 sps:$4 sm:$0xff]   ;;  %v1204_v25 = vld [vmem:[%s1573_s0 + $0xc4] ss:$16 sps:$4 sm:$0xff]  }
   0xe   : > { %v1206_v26 = vld [vmem:[%s1573_s0 + $0xcc] ss:$16 sps:$4 sm:$0xff]   ;;  %v1208_v27 = vld [vmem:[%s1573_s0 + $0xc0] ss:$16 sps:$4 sm:$0xff]   ;;  %v1209_v28 = vld [vmem:[%s1573_s0 + $0xc8] ss:$16 sps:$4 sm:$0xff]  }
   0xf   : > { %v1210_v29 = vld [vmem:[%s1573_s0 + $0xe4] ss:$16 sps:$4 sm:$0xff]   ;;  %v1212_v30 = vld [vmem:[%s1573_s0 + $0xec] ss:$16 sps:$4 sm:$0xff]   ;;  %v1214_v31 = vld [vmem:[%s1573_s0 + $0xe0] ss:$16 sps:$4 sm:$0xff]  }
  0x10   : > { %711 = vmatpush1.bf16.msra.mxu0 %v1184_v11  ;;  %797 = vmatpush1.bf16.msra.mxu1 %v1185_v12  ;;  %v1215_v32 = vld [vmem:[%s1573_s0 + $0xe8] ss:$16 sps:$4 sm:$0xff]   ;;  %v1216_v33 = vld [vmem:[%s1573_s0 + $0x104] ss:$16 sps:$4 sm:$0xff]   ;;  %v1218_v34 = vld [vmem:[%s1573_s0 + $0x10c] ss:$16 sps:$4 sm:$0xff]  }
  0x11   : > { %712 = vmatprep.subr.bf16.mxu0 %v1186_v13  ;;  %798 = vmatprep.subr.bf16.mxu1 %v1188_v14  ;;  %v1220_v35 = vld [vmem:[%s1573_s0 + $0x100] ss:$16 sps:$4 sm:$0xff]   ;;  %v1221_v36 = vld [vmem:[%s1573_s0 + $0x108] ss:$16 sps:$4 sm:$0xff]   ;;  %v1222_v37 = vld [vmem:[%s1573_s0 + $0x124] ss:$16 sps:$4 sm:$0xff]  }
  0x12   : > { %v1224_v38 = vld [vmem:[%s1573_s0 + $0x12c] ss:$16 sps:$4 sm:$0xff]   ;;  %s1579_s29 = smov (!%p225_p3, %s1059_s29), 3  ;;  %v1226_v39 = vld [vmem:[%s1573_s0 + $0x120] ss:$16 sps:$4 sm:$0xff]   ;;  %vm702_vm0 = vcmask 261120  }
  0x13   : > { %v1227_v40 = vld [vmem:[%s1573_s0 + $0x128] ss:$16 sps:$4 sm:$0xff]   ;;  %v1228_v41 = vld [vmem:[%s1573_s0 + $0x144] ss:$16 sps:$4 sm:$0xff]   ;;  %v1230_v42 = vld [vmem:[%s1573_s0 + $0x14c] ss:$16 sps:$4 sm:$0xff]  }
  0x14   : > { %713 = vmatpush1.bf16.msra.mxu0 %v1190_v15  ;;  %799 = vmatpush1.bf16.msra.mxu1 %v1191_v16  ;;  %s1156_s30 = smul.u32 12, %s1579_s29  ;;  %v1232_v43 = vld [vmem:[%s1573_s0 + $0x140] ss:$16 sps:$4 sm:$0xff]   ;;  %v1233_v44 = vld [vmem:[%s1573_s0 + $0x148] ss:$16 sps:$4 sm:$0xff]  }
  0x15   : > { %714 = vmatprep.subr.bf16.mxu0 %v1192_v17  ;;  %800 = vmatprep.subr.bf16.mxu1 %v1194_v18  ;;  %v1234_v45 = vld [vmem:[%s1573_s0 + $0x164] ss:$16 sps:$4 sm:$0xff]   ;;  %v1236_v46 = vld [vmem:[%s1573_s0 + $0x16c] ss:$16 sps:$4 sm:$0xff]   ;;  %v1238_v47 = vld [vmem:[%s1573_s0 + $0x160] ss:$16 sps:$4 sm:$0xff]  }
  0x16   : > { %s1474_s14 = scalar_lea.vmem %s1574_s1, %s1156_s30  ;;  %v1239_v48 = vld [vmem:[%s1573_s0 + $0x168] ss:$16 sps:$4 sm:$0xff]   ;;  %v1240_v49 = vld [vmem:[%s1573_s0 + $0x184] ss:$16 sps:$4 sm:$0xff]   ;;  %v1242_v51 = vld [vmem:[%s1573_s0 + $0x18c] ss:$16 sps:$4 sm:$0xff]  }
  0x17   : > { %v1266_v50 = vld [vmem:[%s1474_s14 + $0x4] ss:$12 sps:$4 sm:$0xff]   ;;  %v1245_v53 = vld [vmem:[%s1573_s0 + $0x188] ss:$16 sps:$4 sm:$0xff]   ;;  %v1248_v55 = vld [vmem:[%s1573_s0 + $0x1ac] ss:$16 sps:$4 sm:$0xff]  }
  0x18   : > { %715 = vmatpush1.bf16.msra.mxu0 %v1196_v19  ;;  %801 = vmatpush1.bf16.msra.mxu1 %v1197_v20  ;;  %v1244_v52 = vld [vmem:[%s1573_s0 + $0x180] ss:$16 sps:$4 sm:$0xff]   ;;  %v1246_v54 = vld [vmem:[%s1573_s0 + $0x1a4] ss:$16 sps:$4 sm:$0xff]   ;;  %v1251_v57 = vld [vmem:[%s1573_s0 + $0x1a8] ss:$16 sps:$4 sm:$0xff]  }
  0x19   : > { %716 = vmatprep.subr.bf16.mxu0 %v1198_v21  ;;  %802 = vmatprep.subr.bf16.mxu1 %v1200_v22  ;;  %v1250_v56 = vld [vmem:[%s1573_s0 + $0x1a0] ss:$16 sps:$4 sm:$0xff]   ;;  %v1252_v58 = vld [vmem:[%s1573_s0 + $0x1c4] ss:$16 sps:$4 sm:$0xff]   ;;  %v1254_v59 = vld [vmem:[%s1573_s0 + $0x1cc] ss:$16 sps:$4 sm:$0xff]  }
  0x1a   : > { %738 = vmatprep.mubr.bf16.mxu0 %v1266_v50  ;;  %824 = vmatprep.mubr.bf16.mxu1 %v1266_v50  ;;  %v1256_v60 = vld [vmem:[%s1573_s0 + $0x1c0] ss:$16 sps:$4 sm:$0xff]   ;;  %v1257_v61 = vld [vmem:[%s1573_s0 + $0x1c8] ss:$16 sps:$4 sm:$0xff]   ;;  %v1258_v62 = vld [vmem:[%s1573_s0 + $0x1e4] ss:$16 sps:$4 sm:$0xff]  }
  0x1b   : > { %v1260_v63 = vld [vmem:[%s1573_s0 + $0x1ec] ss:$16 sps:$4 sm:$0xff]   ;;  %v1262_v0 = vld [vmem:[%s1573_s0 + $0x1e0] ss:$16 sps:$4 sm:$0xff]   ;;  %v1263_v1 = vld [vmem:[%s1573_s0 + $0x1e8] ss:$16 sps:$4 sm:$0xff]  }
  0x1c   : > { %717 = vmatpush1.bf16.msra.mxu0 %v1202_v23  ;;  %803 = vmatpush1.bf16.msra.mxu1 %v1203_v24  ;;  %v1270_v3 = vld [vmem:[%s1573_s0 + $0x204] ss:$16 sps:$4 sm:$0xff]   ;;  %v1273_v4 = vld [vmem:[%s1573_s0 + $0x20c] ss:$16 sps:$4 sm:$0xff]   ;;  %v1268_v6 = vld [vmem:[%s1573_s0 + $0x200] ss:$16 sps:$4 sm:$0xff]  }
  0x1d   : > { %718 = vmatprep.subr.bf16.mxu0 %v1204_v25  ;;  %804 = vmatprep.subr.bf16.mxu1 %v1206_v26  ;;  %v1264_v5 = vld [vmem:[%s1474_s14] ss:$12 sps:$4 sm:$0xff]   ;;  %v1271_v7 = vld [vmem:[%s1573_s0 + $0x208] ss:$16 sps:$4 sm:$0xff]   ;;  %v1276_v8 = vld [vmem:[%s1573_s0 + $0x224] ss:$16 sps:$4 sm:$0xff]  }
  0x1e   : > { %v1279_v9 = vld [vmem:[%s1573_s0 + $0x22c] ss:$16 sps:$4 sm:$0xff]   ;;  %v1274_v10 = vld [vmem:[%s1573_s0 + $0x220] ss:$16 sps:$4 sm:$0xff]   ;;  %v1277_v11 = vld [vmem:[%s1573_s0 + $0x228] ss:$16 sps:$4 sm:$0xff]  }
  0x1f   : > { %v1267_v12 = vld [vmem:[%s1474_s14 + $0x8] ss:$12 sps:$4 sm:$0xff]   ;;  %s1062_s14 = sshll.u32 %s1579_s29, 3  ;;  %s1147_s30 = sshll.u32 %s1579_s29, 5 }
  0x20   : > { %719 = vmatpush1.bf16.msra.mxu0 %v1208_v27  ;;  %805 = vmatpush1.bf16.msra.mxu1 %v1209_v28  ;;  %s241_s25 = scalar_lea.vmem %s1576_s3, %s1062_s14  ;;  %s235_s28 = scalar_lea.vmem %s1575_s2, %s1062_s14 }
  0x21   : > { %720 = vmatprep.subr.bf16.mxu0 %v1210_v29  ;;  %806 = vmatprep.subr.bf16.mxu1 %v1212_v30  ;;  %s248_s7 = scalar_lea.vmem %s1577_s4, %s1147_s30 }
  0x24   : > { %721 = vmatpush1.bf16.msra.mxu0 %v1214_v31  ;;  %807 = vmatpush1.bf16.msra.mxu1 %v1215_v32 }
  0x25   : > { %722 = vmatprep.subr.bf16.mxu0 %v1216_v33  ;;  %808 = vmatprep.subr.bf16.mxu1 %v1218_v34 }
  0x28   : > { %723 = vmatpush1.bf16.msra.mxu0 %v1220_v35  ;;  %809 = vmatpush1.bf16.msra.mxu1 %v1221_v36 }
  0x29   : > { %724 = vmatprep.subr.bf16.mxu0 %v1222_v37  ;;  %810 = vmatprep.subr.bf16.mxu1 %v1224_v38 }
  0x2c   : > { %725 = vmatpush1.bf16.msra.mxu0 %v1226_v39  ;;  %811 = vmatpush1.bf16.msra.mxu1 %v1227_v40 }
  0x2d   : > { %726 = vmatprep.subr.bf16.mxu0 %v1228_v41  ;;  %812 = vmatprep.subr.bf16.mxu1 %v1230_v42 }
  0x30   : > { %727 = vmatpush1.bf16.msra.mxu0 %v1232_v43  ;;  %813 = vmatpush1.bf16.msra.mxu1 %v1233_v44 }
  0x31   : > { %728 = vmatprep.subr.bf16.mxu0 %v1234_v45  ;;  %814 = vmatprep.subr.bf16.mxu1 %v1236_v46 }
  0x34   : > { %729 = vmatpush1.bf16.msra.mxu0 %v1238_v47  ;;  %815 = vmatpush1.bf16.msra.mxu1 %v1239_v48 }
  0x35   : > { %730 = vmatprep.subr.bf16.mxu0 %v1240_v49  ;;  %816 = vmatprep.subr.bf16.mxu1 %v1242_v51 }
  0x38   : > { %731 = vmatpush1.bf16.msra.mxu0 %v1244_v52  ;;  %817 = vmatpush1.bf16.msra.mxu1 %v1245_v53  ;;  %v944_v52 = vld [vmem:[%s241_s25] sm:$0xff] }
  0x39   : > { %732 = vmatprep.subr.bf16.mxu0 %v1246_v54  ;;  %818 = vmatprep.subr.bf16.mxu1 %v1248_v55 }
  0x3c   : > { %733 = vmatpush1.bf16.msra.mxu0 %v1250_v56  ;;  %819 = vmatpush1.bf16.msra.mxu1 %v1251_v57 }
  0x3d   : > { %734 = vmatprep.subr.bf16.mxu0 %v1252_v58  ;;  %820 = vmatprep.subr.bf16.mxu1 %v1254_v59  ;;  %v922_v59 = vld [vmem:[%s235_s28] sm:$0xff] }
  0x40   : > { %735 = vmatpush1.bf16.msra.mxu0 %v1256_v60  ;;  %821 = vmatpush1.bf16.msra.mxu1 %v1257_v61 }
  0x41   : > { %736 = vmatprep.subr.bf16.mxu0 %v1258_v62  ;;  %822 = vmatprep.subr.bf16.mxu1 %v1260_v63  ;;  %v923_v62 = vld [vmem:[%s235_s28 + $0x8] sm:$0xff] }
  0x44   : > { %737 = vmatpush1.bf16.msra.mxu0 %v1262_v0  ;;  %823 = vmatpush1.bf16.msra.mxu1 %v1263_v1  ;;  %v945_v1 = vld [vmem:[%s241_s25 + $0x8] sm:$0xff] }
  0x45   : > { %749 = vmatprep.subr.bf16.mxu0 %v1270_v3  ;;  %835 = vmatprep.subr.bf16.mxu1 %v1273_v4 }
  0x47   : > { %739 = vmatmul.mubr.bf16.vlgmr.msra.gmra.mrb[0].mxu0 %v1264_v5  ;;  %825 = vmatmul.mubr.bf16.vlgmr.msra.gmra.mrb[0].mxu1 %v1264_v5 }
  0x48   : > { %750 = vmatpush1.bf16.msra.mxu0 %v1268_v6  ;;  %836 = vmatpush1.bf16.msra.mxu1 %v1271_v7 }
  0x49   : > { %751 = vmatprep.subr.bf16.mxu0 %v1276_v8  ;;  %837 = vmatprep.subr.bf16.mxu1 %v1279_v9 }
  0x4a   : > { %781 = vmatprep.mubr.bf16.mxu0 %v1292_v2  ;;  %867 = vmatprep.mubr.bf16.mxu1 %v1292_v2 }
  0x4c   : > { %752 = vmatpush1.bf16.msra.mxu0 %v1274_v10  ;;  %838 = vmatpush1.bf16.msra.mxu1 %v1277_v11 }
  0x53   : > { %1143 = vmatmul.mubr.msk.bf16.vlgmr.msra.gmra.mrb[0].mxu0 %vm702_vm0, %v1267_v12  ;;  %1144 = vmatmul.mubr.msk.bf16.vlgmr.msra.gmra.mrb[0].mxu1 %vm702_vm0, %v1267_v12 }
 0x126   : > { %v783_v13 = vpop.f32.mrb[0].mxu0  ;;  %v869_v14 = vpop.f32.mrb[0].mxu1 }
 0x127   : > { %v785_v15 = vpop.f32.mrb[1].mxu0  ;;  %v871_v16 = vpop.f32.mrb[1].mxu1 }
 0x128   : > { %v878_v17 = vadd.f32 %v785_v15, %v783_v13  ;;  %v787_v18 = vpop.f32.mrb[2].mxu0  ;;  %v873_v19 = vpop.f32.mrb[2].mxu1 }
 0x129   : > { %v789_v20 = vpop.f32.mrb[3].mxu0  ;;  %v875_v21 = vpop.f32.mrb[3].mxu1 }
 0x12a   : > { %v883_v22 = vadd.f32 %v789_v20, %v787_v18  ;;  %v879_v23 = vadd.f32 %v878_v17, %v869_v14 }
 0x12c   : > { %v884_v24 = vadd.f32 %v883_v22, %v873_v19  ;;  %v880_v25 = vadd.f32 %v879_v23, %v871_v16 }
 0x12e   : > { %v885_v2 = vadd.f32 %v884_v24, %v875_v21  ;;  %881 = vadd.xlane.f32.xlu0 %v880_v25 }
 0x132   : > { %886 = vadd.xlane.f32.xlu0 %v885_v2 }
 0x1bb   : > { %v882_v26 = vpop.xlane.xlu0 %881 }
 0x1bc   : > { %v888_v27 = vmul.f32 0.001953125, %v882_v26 }
 0x1be   : > { %v890_v28 = vsub.f32 %v783_v13, %v888_v27  ;;  %v891_v29 = vsub.f32 %v785_v15, %v888_v27  ;;  %v892_v30 = vsub.f32 %v869_v14, %v888_v27  ;;  %v893_v32 = vsub.f32 %v871_v16, %v888_v27 }
 0x1bf   : > { %v887_v31 = vpop.xlane.xlu0 %886 }
 0x1c0   : > { %v889_v33 = vmul.f32 0.001953125, %v887_v31  ;;  %v898_v34 = vmul.f32 %v890_v28, %v890_v28  ;;  %v899_v35 = vmul.f32 %v891_v29, %v891_v29  ;;  %v900_v36 = vmul.f32 %v892_v30, %v892_v30 }
 0x1c1   : > { %v901_v41 = vmul.f32 %v893_v32, %v893_v32 }
 0x1c2   : > { %v894_v37 = vsub.f32 %v787_v18, %v889_v33  ;;  %v895_v38 = vsub.f32 %v789_v20, %v889_v33  ;;  %v906_v39 = vadd.f32 %v899_v35, %v898_v34  ;;  %v896_v40 = vsub.f32 %v873_v19, %v889_v33 }
 0x1c3   : > { %v897_v43 = vsub.f32 %v875_v21, %v889_v33 }
 0x1c4   : > { %v907_v42 = vadd.f32 %v906_v39, %v900_v36  ;;  %v902_v44 = vmul.f32 %v894_v37, %v894_v37  ;;  %v903_v45 = vmul.f32 %v895_v38, %v895_v38  ;;  %v904_v47 = vmul.f32 %v896_v40, %v896_v40 }
 0x1c5   : > { %v905_v49 = vmul.f32 %v897_v43, %v897_v43 }
 0x1c6   : > { %v908_v46 = vadd.f32 %v907_v42, %v901_v41  ;;  %v911_v48 = vadd.f32 %v903_v45, %v902_v44 }
 0x1c8   : > { %909 = vadd.xlane.f32.xlu1 %v908_v46  ;;  %v912_v50 = vadd.f32 %v911_v48, %v904_v47 }
 0x1ca   : > { %v913_v51 = vadd.f32 %v912_v50, %v905_v49 }
 0x1cc   : > { %914 = vadd.xlane.f32.xlu1 %v913_v51 }
 0x1dd   : > { %948 = vperm.xlu1 %1167, %v944_v52  }
 0x255   : > { %v910_v53 = vpop.xlane.xlu1 %909 }
 0x256   : > { %v916_v54 = vmul.f32 0.001953125, %v910_v53 }
 0x258   : > { %v918_v55 = vadd.f32 1e-05, %v916_v54 }
 0x259   : > { %v915_v56 = vpop.xlane.xlu1 %914 }
 0x25a   : > { %1280 = vrsqrt.f32 %v918_v55  ;;  %v917_v57 = vmul.f32 0.001953125, %v915_v56 }
 0x25c   : > { %v919_v58 = vadd.f32 1e-05, %v917_v57 }
 0x25d   : > { %v949_v3 = vpop.permute.xlu1 %948 }
 0x25e   : > { %1282 = vrsqrt.f32 %v919_v58 }
 0x264   : > { %v1281_v60 = vpop.eup %1280 }
 0x265   : > { %v924_v61 = vmul.f32 %v1281_v60, %v922_v59 }
 0x267   : > { %928 = vperm.xlu0 %1166, %v924_v61  }
 0x268   : > { %v1283_v63 = vpop.eup %1282 }
 0x269   : > { %v925_v0 = vmul.f32 %v1283_v63, %v923_v62 }
 0x26b   : > { %933 = vperm.xlu1 %1167, %v925_v0  }
 0x26f   : > { %953 = vperm.xlu1 %1167, %v945_v1  }
 0x2e6   : > { %v929_v4 = vpop.permute.xlu0 %928 }
 0x2e7   : > { %v936_v5 = vmul.f32 %v929_v4, %v890_v28  ;;  %v937_v6 = vmul.f32 %v929_v4, %v891_v29  ;;  %v938_v7 = vmul.f32 %v929_v4, %v892_v30  ;;  %v939_v8 = vmul.f32 %v929_v4, %v893_v32 }
 0x2e9   : > { %v956_v9 = vadd.f32 %v949_v3, %v936_v5  ;;  %v957_v10 = vadd.f32 %v949_v3, %v937_v6  ;;  %v958_v11 = vadd.f32 %v949_v3, %v938_v7  ;;  %v959_v12 = vadd.f32 %v949_v3, %v939_v8 }
 0x2ea   : > { %v934_v13 = vpop.permute.xlu1 %933 }
 0x2eb   : > { %964 = vst [vmem:[%s248_s7] sm:$0xff] %v956_v9  ;;  %965 = vst [vmem:[%s248_s7 + $0x8] sm:$0xff] %v957_v10  ;;  %v940_v14 = vmul.f32 %v934_v13, %v894_v37  ;;  %v941_v15 = vmul.f32 %v934_v13, %v895_v38  ;;  %v942_v16 = vmul.f32 %v934_v13, %v896_v40 }
 0x2ec   : > { %966 = vst [vmem:[%s248_s7 + $0x10] sm:$0xff] %v958_v11  ;;  %967 = vst [vmem:[%s248_s7 + $0x18] sm:$0xff] %v959_v12  ;;  %v943_v17 = vmul.f32 %v934_v13, %v897_v43 }
 0x2ee   : > { %v954_v18 = vpop.permute.xlu1 %953 }
 0x2ef   : > { %v960_v19 = vadd.f32 %v954_v18, %v940_v14  ;;  %v961_v20 = vadd.f32 %v954_v18, %v941_v15  ;;  %v962_v21 = vadd.f32 %v954_v18, %v942_v16  ;;  %v963_v22 = vadd.f32 %v954_v18, %v943_v17 }
 0x2f1   : > { %968 = vst [vmem:[%s248_s7 + $0x20] sm:$0xff] %v960_v19  ;;  %969 = vst [vmem:[%s248_s7 + $0x28] sm:$0xff] %v961_v20 }
 0x2f2   : > { %970 = vst [vmem:[%s248_s7 + $0x30] sm:$0xff] %v962_v21  ;;  %971 = vst [vmem:[%s248_s7 + $0x38] sm:$0xff] %v963_v22 }
 0x2f3 PF: > { %s14_s15 = sadd.s32 1, %s1290_s15  }
 0x2f4   : > { %p11_p4 = scmp.ge.s32.totalorder %s14_s15, 4  }
 0x2f6   :  { %13 = sbr.rel (!%p11_p4) target bundleno = 1 (0x1), region = 72 }

</bundles_post_ra>
